<compile_context>
chip_gen: v5e
topology: v5e:2x2
jax: 0.10.0
libtpu: 0.0.40
codegen_flags: <defaults>
</compile_context>

<pallas_src>
import math

import jax
import jax.numpy as jnp
from jax import lax
from jax.experimental import pallas as pl
from jax.experimental.pallas import tpu as pltpu

# ---------------- configuration (small, consistent with the module) ----------------
NUM_CATEGORIES = [7, 5, 11]   # 3 categorical features
NUM_CONT = 6                  # continuous features
EMBED_DIM = 32                # d_model
NUM_HEADS = 4                 # head_dim = 8
NUM_LAYERS = 2
FFN_DIM = 512                 # hardcoded dim_feedforward in the PyTorch module
LN_EPS = 1e-5
BATCH = 4

C = len(NUM_CATEGORIES)
HEAD_DIM = EMBED_DIM // NUM_HEADS
NTOT_PAD = 32                 # merged embedding table padded to 32 rows
NEG_INF = -1e30


def _layernorm(x, gamma, beta):
    mu = jnp.mean(x, axis=-1, keepdims=True)
    xc = x - mu
    var = jnp.mean(xc * xc, axis=-1, keepdims=True)
    return xc * lax.rsqrt(var + LN_EPS) * gamma + beta


# ----------------------------- the Pallas kernel ------------------------------------
def tab_transformer_kernel(codes_ref, xcont_ref, mask_ref, table_ref, wc_ref, bc_ref,
                           wqkv_ref, bqkv_ref, ow_ref, ob_ref,
                           w1_ref, b1_ref, w2_ref, b2_ref,
                           g1_ref, be1_ref, g2_ref, be2_ref,
                           fcw_ref, fcb_ref, out_ref):
    Cc = C
    D = EMBED_DIM
    H = NUM_HEADS
    hd = HEAD_DIM
    R = codes_ref.shape[0]                    # 12 rows, row index = c*B + b
    B = R // Cc
    N = table_ref.shape[0]                    # 32 (padded merged table)
    scale = 1.0 / math.sqrt(hd)

    # ---- fused categorical gather: ONE one-hot matmul against the merged table ----
    onehot = (codes_ref[...] ==
              lax.broadcasted_iota(jnp.int32, (R, N), 1)).astype(jnp.float32)   # (R, N)
    emb = jnp.dot(onehot, table_ref[...], preferred_element_type=jnp.float32)   # (R, D)
    cont = jnp.dot(xcont_ref[...], wc_ref[...],
                   preferred_element_type=jnp.float32) + bc_ref[...]            # (R, D)
    x = emb + cont                                                              # (R, D)

    # block-diagonal additive mask, broadcast ONCE (hoisted out of the layer loop)
    mask = jnp.broadcast_to(mask_ref[...], (H, R, R))                           # (H, R, R)

    # ---- transformer encoder layers (post-norm, attention over the B axis) ----
    for l in range(NUM_LAYERS):
        # fused QKV projection: one lane-dense (R,32)@(32,96) MXU push
        qkv = jnp.dot(x, wqkv_ref[l],
                      preferred_element_type=jnp.float32) + bqkv_ref[l]         # (R, 3D)

        def heads(base):
            # static lane slices at 8-lane offsets -> head-major (H, R, hd)
            return jnp.stack(
                [qkv[:, base + h * hd: base + (h + 1) * hd] for h in range(H)],
                axis=0)

        q = heads(0)                                                            # (H, R, hd)
        k = heads(D)
        v = heads(2 * D)

        # head-batched attention over the full row axis; mask kills cross-column pairs
        s = jnp.einsum("hqd,hkd->hqk", q, k,
                       preferred_element_type=jnp.float32) * scale + mask       # (H, R, R)
        m = jnp.max(s, axis=-1, keepdims=True)
        e = jnp.exp(s - m)
        p = e * pl.reciprocal(jnp.sum(e, axis=-1, keepdims=True), approx=True)
        o = jnp.einsum("hqk,hkd->hqd", p, v,
                       preferred_element_type=jnp.float32)                      # (H, R, hd)

        # output projection, head-batched then summed over heads (== concat @ W_o)
        proj = lax.dot_general(o, ow_ref[l], (((2,), (1,)), ((0,), (0,))),
                               preferred_element_type=jnp.float32)              # (H, R, D)
        attn_out = jnp.sum(proj, axis=0) + ob_ref[l]                            # (R, D)

        x = _layernorm(x + attn_out, g1_ref[l], be1_ref[l])

        # feed forward (Linear -> ReLU -> Linear), residual, post-norm
        hidden = jnp.maximum(
            jnp.dot(x, w1_ref[l], preferred_element_type=jnp.float32) + b1_ref[l], 0.0)
        ffo = jnp.dot(hidden, w2_ref[l],
                      preferred_element_type=jnp.float32) + b2_ref[l]
        x = _layernorm(x + ffo, g2_ref[l], be2_ref[l])

    # ---- mean over the categorical axis via static sublane slices ----
    pooled = x[0:B, :]
    for c in range(1, Cc):
        pooled = pooled + x[c * B:(c + 1) * B, :]
    pooled = pooled * (1.0 / Cc)                                                # (B, D)

    final = jnp.dot(pooled, fcw_ref[...],
                    preferred_element_type=jnp.float32) + fcb_ref[...]          # (B, D)
    # lane-dense (1, B*D) output slab; wrapper reshapes back to (B, D)
    out_ref[...] = jnp.concatenate([final[b:b + 1, :] for b in range(B)], axis=1)


# ----------------------------- wrapper / glue ---------------------------------------
def prepare_kernel_params(p):
    """One-time layout plumbing: fuse QKV weights, split out-proj per head,
    merge + pad the categorical embedding tables."""
    L, D, H, hd = NUM_LAYERS, EMBED_DIM, NUM_HEADS, HEAD_DIM
    kp = dict(p)
    # fused QKV weight/bias, column order [Q | K | V] with heads contiguous inside each
    kp["wqkv"] = jnp.concatenate([p["wq"], p["wk"], p["wv"]], axis=2)   # (L, D, 3D)
    kp["bqkv"] = jnp.concatenate([p["bq"], p["bk"], p["bv"]], axis=2)   # (L, 1, 3D)
    kp["owh"] = p["ow"].reshape(L, H, hd, D)                            # (L, H, hd, D)
    # single merged categorical table, zero-padded to NTOT_PAD rows
    ntot = sum(NUM_CATEGORIES)
    table = jnp.concatenate(p["emb_tables"], axis=0)                    # (ntot, D)
    kp["table"] = jnp.pad(table, ((0, NTOT_PAD - ntot), (0, 0)))        # (NTOT_PAD, D)
    return kp


def tab_transformer_forward(kp, x_cat, x_cont):
    B = x_cat.shape[0]
    R = C * B

    # layout plumbing (plain XLA, outside the kernel)
    offs, acc = [], 0
    for n in NUM_CATEGORIES:
        offs.append(acc)
        acc += n
    offsets = jnp.asarray(offs, jnp.int32)                                       # (C,)
    # column-major flattened codes with per-column offsets: row r = c*B + b
    codes = (x_cat.astype(jnp.int32) + offsets[None, :]).T.reshape(R, 1)         # (R, 1)
    xcont_r = jnp.tile(x_cont.astype(jnp.float32), (C, 1))                       # (R, F)
    # block-diagonal additive attention mask (0 on same-column pairs, -1e30 off)
    col_id = jnp.arange(R, dtype=jnp.int32) // B
    mask = jnp.where(col_id[:, None] == col_id[None, :],
                     0.0, NEG_INF).astype(jnp.float32)                           # (R, R)

    args = [
        codes, xcont_r, mask,
        kp["table"], kp["wc"], kp["bc"],
        kp["wqkv"], kp["bqkv"], kp["owh"], kp["ob"],
        kp["w1"], kp["b1"], kp["w2"], kp["b2"],
        kp["g1"], kp["be1"], kp["g2"], kp["be2"],
        kp["fcw"], kp["fcb"],
    ]

    # advisory cost hint (launch-overhead / param-DMA dominated regime)
    flops = (2 * R * NTOT_PAD * EMBED_DIM
             + 2 * R * NUM_CONT * EMBED_DIM
             + NUM_LAYERS * (2 * R * EMBED_DIM * (3 * EMBED_DIM)
                             + 2 * 2 * NUM_HEADS * R * R * HEAD_DIM
                             + 2 * NUM_HEADS * R * HEAD_DIM * EMBED_DIM
                             + 2 * 2 * R * EMBED_DIM * FFN_DIM)
             + 2 * B * EMBED_DIM * EMBED_DIM)
    transcendentals = NUM_LAYERS * (NUM_HEADS * R * R + NUM_HEADS * R + 2 * R)
    bytes_accessed = (sum(int(a.size) * a.dtype.itemsize for a in args)
                      + B * EMBED_DIM * 4)

    # No grid: whole problem (<1 MiB) resides in VMEM on one TensorCore.
    # TODO(synk): for larger BATCH add a parallel batch grid axis (v7x 2-TC sharding).
    out = pl.pallas_call(
        tab_transformer_kernel,
        out_shape=jax.ShapeDtypeStruct((1, B * EMBED_DIM), jnp.float32),
        in_specs=[pl.BlockSpec(memory_space=pltpu.MemorySpace.VMEM)] * len(args),
        out_specs=pl.BlockSpec(memory_space=pltpu.MemorySpace.VMEM),
        cost_estimate=pl.CostEstimate(flops=flops,
                                      transcendentals=transcendentals,
                                      bytes_accessed=bytes_accessed),
    )(*args)
    return out.reshape(B, EMBED_DIM)


# ----------------------------- pure-JAX reference -----------------------------------
def reference_forward(params, x_cat, x_cont):
    emb = jnp.stack([params["emb_tables"][i][x_cat[:, i]] for i in range(C)], axis=1)
    cont = x_cont @ params["wc"] + params["bc"]
    x = emb + cont[:, None, :]
    B = x.shape[0]
    for l in range(NUM_LAYERS):
        q = jnp.einsum("bcd,de->bce", x, params["wq"][l]) + params["bq"][l]
        k = jnp.einsum("bcd,de->bce", x, params["wk"][l]) + params["bk"][l]
        v = jnp.einsum("bcd,de->bce", x, params["wv"][l]) + params["bv"][l]
        q = q.reshape(B, C, NUM_HEADS, HEAD_DIM)
        k = k.reshape(B, C, NUM_HEADS, HEAD_DIM)
        v = v.reshape(B, C, NUM_HEADS, HEAD_DIM)
        s = jnp.einsum("bchk,schk->chbs", q, k) / math.sqrt(HEAD_DIM)
        p = jax.nn.softmax(s, axis=-1)
        a = jnp.einsum("chbs,schk->bchk", p, v).reshape(B, C, EMBED_DIM)
        a = jnp.einsum("bcd,de->bce", a, params["ow"][l]) + params["ob"][l]
        x = _layernorm(x + a, params["g1"][l], params["be1"][l])
        ff = jax.nn.relu(jnp.einsum("bcd,df->bcf", x, params["w1"][l]) + params["b1"][l])
        ff = jnp.einsum("bcf,fd->bcd", ff, params["w2"][l]) + params["b2"][l]
        x = _layernorm(x + ff, params["g2"][l], params["be2"][l])
    pooled = x.mean(axis=1)
    return pooled @ params["fcw"] + params["fcb"]


# ----------------------------- parameter init ---------------------------------------
def init_params(key):
    D, F, FF, L = EMBED_DIM, NUM_CONT, FFN_DIM, NUM_LAYERS
    keys = jax.random.split(key, 32)
    kit = iter(keys)
    s = 0.05
    params = {}
    params["emb_tables"] = [
        s * jax.random.normal(next(kit), (n, D), jnp.float32) for n in NUM_CATEGORIES
    ]
    # Linear weights stored pre-transposed as (in, out).
    params["wc"] = s * jax.random.normal(next(kit), (F, D), jnp.float32)
    params["bc"] = s * jax.random.normal(next(kit), (1, D), jnp.float32)
    params["wq"] = s * jax.random.normal(next(kit), (L, D, D), jnp.float32)
    params["wk"] = s * jax.random.normal(next(kit), (L, D, D), jnp.float32)
    params["wv"] = s * jax.random.normal(next(kit), (L, D, D), jnp.float32)
    params["bq"] = s * jax.random.normal(next(kit), (L, 1, D), jnp.float32)
    params["bk"] = s * jax.random.normal(next(kit), (L, 1, D), jnp.float32)
    params["bv"] = s * jax.random.normal(next(kit), (L, 1, D), jnp.float32)
    params["ow"] = s * jax.random.normal(next(kit), (L, D, D), jnp.float32)
    params["ob"] = s * jax.random.normal(next(kit), (L, 1, D), jnp.float32)
    params["w1"] = s * jax.random.normal(next(kit), (L, D, FF), jnp.float32)
    params["b1"] = s * jax.random.normal(next(kit), (L, 1, FF), jnp.float32)
    params["w2"] = s * jax.random.normal(next(kit), (L, FF, D), jnp.float32)
    params["b2"] = s * jax.random.normal(next(kit), (L, 1, D), jnp.float32)
    params["g1"] = 1.0 + 0.1 * jax.random.normal(next(kit), (L, 1, D), jnp.float32)
    params["be1"] = 0.1 * jax.random.normal(next(kit), (L, 1, D), jnp.float32)
    params["g2"] = 1.0 + 0.1 * jax.random.normal(next(kit), (L, 1, D), jnp.float32)
    params["be2"] = 0.1 * jax.random.normal(next(kit), (L, 1, D), jnp.float32)
    params["fcw"] = s * jax.random.normal(next(kit), (D, D), jnp.float32)
    params["fcb"] = s * jax.random.normal(next(kit), (1, D), jnp.float32)
    return params


if __name__ == "__main__":
    root = jax.random.PRNGKey(0)
    kp_key, kc1, kc2 = jax.random.split(root, 3)
    params = init_params(kp_key)
    kparams = prepare_kernel_params(params)

    cat_keys = jax.random.split(kc1, C)
    x_cat = jnp.stack(
        [jax.random.randint(cat_keys[i], (BATCH,), 0, NUM_CATEGORIES[i], jnp.int32)
         for i in range(C)],
        axis=1,
    )                                                     # (B, C) int32
    x_cont = jax.random.normal(kc2, (BATCH, NUM_CONT), jnp.float32)   # (B, F)

    out = jax.block_until_ready(tab_transformer_forward(kparams, x_cat, x_cont))
    ref = jax.block_until_ready(reference_forward(params, x_cat, x_cont))

    assert out.shape == (BATCH, EMBED_DIM), out.shape
    assert jnp.allclose(out, ref, rtol=1e-3, atol=1e-3), (
        float(jnp.max(jnp.abs(out - ref))))
    print("KERNEL_OK")
</pallas_src>

<mosaic_0001>
module attributes {stable_mosaic.version = 11 : i64} {
  func.func @tab_transformer_kernel(%arg0: memref<12x1xi32, #tpu.memory_space<vmem>>, %arg1: memref<12x6xf32, #tpu.memory_space<vmem>>, %arg2: memref<12x12xf32, #tpu.memory_space<vmem>>, %arg3: memref<32x32xf32, #tpu.memory_space<vmem>>, %arg4: memref<6x32xf32, #tpu.memory_space<vmem>>, %arg5: memref<1x32xf32, #tpu.memory_space<vmem>>, %arg6: memref<2x32x96xf32, #tpu.memory_space<vmem>>, %arg7: memref<2x1x96xf32, #tpu.memory_space<vmem>>, %arg8: memref<2x4x8x32xf32, #tpu.memory_space<vmem>>, %arg9: memref<2x1x32xf32, #tpu.memory_space<vmem>>, %arg10: memref<2x32x512xf32, #tpu.memory_space<vmem>>, %arg11: memref<2x1x512xf32, #tpu.memory_space<vmem>>, %arg12: memref<2x512x32xf32, #tpu.memory_space<vmem>>, %arg13: memref<2x1x32xf32, #tpu.memory_space<vmem>>, %arg14: memref<2x1x32xf32, #tpu.memory_space<vmem>>, %arg15: memref<2x1x32xf32, #tpu.memory_space<vmem>>, %arg16: memref<2x1x32xf32, #tpu.memory_space<vmem>>, %arg17: memref<2x1x32xf32, #tpu.memory_space<vmem>>, %arg18: memref<32x32xf32, #tpu.memory_space<vmem>>, %arg19: memref<1x32xf32, #tpu.memory_space<vmem>>, %arg20: memref<1x128xf32, #tpu.memory_space<vmem>>) attributes {dimension_semantics = [], scalar_prefetch = 0 : i64, scratch_operands = 0 : i64, tpu.core_type = #tpu.core_type<tc>} {
    %c0 = arith.constant 0 : index
    %c0_0 = arith.constant 0 : index
    %0 = vector.load %arg0[%c0, %c0_0] : memref<12x1xi32, #tpu.memory_space<vmem>>, vector<12x1xi32>
    %1 = tpu.iota {dimensions = array<i32: 1>} : vector<12x32xi32>
    %2 = vector.broadcast %0 : vector<12x1xi32> to vector<12x32xi32>
    %3 = arith.cmpi eq, %2, %1 : vector<12x32xi32>
    %4 = arith.extui %3 : vector<12x32xi1> to vector<12x32xi32>
    %5 = arith.sitofp %4 : vector<12x32xi32> to vector<12x32xf32>
    %c0_1 = arith.constant 0 : index
    %c0_2 = arith.constant 0 : index
    %6 = vector.load %arg3[%c0_1, %c0_2] : memref<32x32xf32, #tpu.memory_space<vmem>>, vector<32x32xf32>
    %cst = arith.constant dense<0.000000e+00> : vector<12x32xf32>
    %7 = tpu.matmul %5, %6, %cst {dimension_numbers = #tpu.dot_dimension_numbers<[1], [0], [0], [1], [0, 0, 1, 1], [], []>} : vector<12x32xf32>, vector<32x32xf32>, vector<12x32xf32> -> vector<12x32xf32>
    %c0_3 = arith.constant 0 : index
    %c0_4 = arith.constant 0 : index
    %8 = vector.load %arg1[%c0_3, %c0_4] : memref<12x6xf32, #tpu.memory_space<vmem>>, vector<12x6xf32>
    %c0_5 = arith.constant 0 : index
    %c0_6 = arith.constant 0 : index
    %9 = vector.load %arg4[%c0_5, %c0_6] : memref<6x32xf32, #tpu.memory_space<vmem>>, vector<6x32xf32>
    %cst_7 = arith.constant dense<0.000000e+00> : vector<12x32xf32>
    %10 = tpu.matmul %8, %9, %cst_7 {dimension_numbers = #tpu.dot_dimension_numbers<[1], [0], [0], [1], [0, 0, 1, 1], [], []>} : vector<12x6xf32>, vector<6x32xf32>, vector<12x32xf32> -> vector<12x32xf32>
    %c0_8 = arith.constant 0 : index
    %c0_9 = arith.constant 0 : index
    %11 = vector.load %arg5[%c0_8, %c0_9] : memref<1x32xf32, #tpu.memory_space<vmem>>, vector<1x32xf32>
    %12 = vector.broadcast %11 : vector<1x32xf32> to vector<12x32xf32>
    %13 = arith.addf %10, %12 : vector<12x32xf32>
    %14 = arith.addf %7, %13 : vector<12x32xf32>
    %c0_10 = arith.constant 0 : index
    %c0_11 = arith.constant 0 : index
    %15 = vector.load %arg2[%c0_10, %c0_11] : memref<12x12xf32, #tpu.memory_space<vmem>>, vector<12x12xf32>
    %16 = vector.shape_cast %15 : vector<12x12xf32> to vector<1x12x12xf32>
    %17 = vector.broadcast %16 : vector<1x12x12xf32> to vector<4x12x12xf32>
    %c0_12 = arith.constant 0 : index
    %c0_13 = arith.constant 0 : index
    %c0_14 = arith.constant 0 : index
    %18 = vector.load %arg6[%c0_12, %c0_13, %c0_14] : memref<2x32x96xf32, #tpu.memory_space<vmem>>, vector<1x32x96xf32>
    %19 = vector.shape_cast %18 : vector<1x32x96xf32> to vector<32x96xf32>
    %cst_15 = arith.constant dense<0.000000e+00> : vector<12x96xf32>
    %20 = tpu.matmul %14, %19, %cst_15 {dimension_numbers = #tpu.dot_dimension_numbers<[1], [0], [0], [1], [0, 0, 1, 1], [], []>} : vector<12x32xf32>, vector<32x96xf32>, vector<12x96xf32> -> vector<12x96xf32>
    %c0_16 = arith.constant 0 : index
    %c0_17 = arith.constant 0 : index
    %c0_18 = arith.constant 0 : index
    %21 = vector.load %arg7[%c0_16, %c0_17, %c0_18] : memref<2x1x96xf32, #tpu.memory_space<vmem>>, vector<1x1x96xf32>
    %22 = vector.shape_cast %21 : vector<1x1x96xf32> to vector<1x96xf32>
    %23 = vector.broadcast %22 : vector<1x96xf32> to vector<12x96xf32>
    %24 = arith.addf %20, %23 : vector<12x96xf32>
    %25 = vector.extract_strided_slice %24 {offsets = [0, 0], sizes = [12, 8], strides = [1, 1]} : vector<12x96xf32> to vector<12x8xf32>
    %26 = vector.extract_strided_slice %24 {offsets = [0, 8], sizes = [12, 8], strides = [1, 1]} : vector<12x96xf32> to vector<12x8xf32>
    %27 = vector.extract_strided_slice %24 {offsets = [0, 16], sizes = [12, 8], strides = [1, 1]} : vector<12x96xf32> to vector<12x8xf32>
    %28 = vector.extract_strided_slice %24 {offsets = [0, 24], sizes = [12, 8], strides = [1, 1]} : vector<12x96xf32> to vector<12x8xf32>
    %29 = vector.shape_cast %25 : vector<12x8xf32> to vector<1x12x8xf32>
    %30 = vector.shape_cast %26 : vector<12x8xf32> to vector<1x12x8xf32>
    %31 = vector.shape_cast %27 : vector<12x8xf32> to vector<1x12x8xf32>
    %32 = vector.shape_cast %28 : vector<12x8xf32> to vector<1x12x8xf32>
    %33 = tpu.concatenate %29, %30, %31, %32 in 0 : vector<1x12x8xf32>, vector<1x12x8xf32>, vector<1x12x8xf32>, vector<1x12x8xf32> -> vector<4x12x8xf32>
    %34 = vector.extract_strided_slice %24 {offsets = [0, 32], sizes = [12, 8], strides = [1, 1]} : vector<12x96xf32> to vector<12x8xf32>
    %35 = vector.extract_strided_slice %24 {offsets = [0, 40], sizes = [12, 8], strides = [1, 1]} : vector<12x96xf32> to vector<12x8xf32>
    %36 = vector.extract_strided_slice %24 {offsets = [0, 48], sizes = [12, 8], strides = [1, 1]} : vector<12x96xf32> to vector<12x8xf32>
    %37 = vector.extract_strided_slice %24 {offsets = [0, 56], sizes = [12, 8], strides = [1, 1]} : vector<12x96xf32> to vector<12x8xf32>
    %38 = vector.shape_cast %34 : vector<12x8xf32> to vector<1x12x8xf32>
    %39 = vector.shape_cast %35 : vector<12x8xf32> to vector<1x12x8xf32>
    %40 = vector.shape_cast %36 : vector<12x8xf32> to vector<1x12x8xf32>
    %41 = vector.shape_cast %37 : vector<12x8xf32> to vector<1x12x8xf32>
    %42 = tpu.concatenate %38, %39, %40, %41 in 0 : vector<1x12x8xf32>, vector<1x12x8xf32>, vector<1x12x8xf32>, vector<1x12x8xf32> -> vector<4x12x8xf32>
    %43 = vector.extract_strided_slice %24 {offsets = [0, 64], sizes = [12, 8], strides = [1, 1]} : vector<12x96xf32> to vector<12x8xf32>
    %44 = vector.extract_strided_slice %24 {offsets = [0, 72], sizes = [12, 8], strides = [1, 1]} : vector<12x96xf32> to vector<12x8xf32>
    %45 = vector.extract_strided_slice %24 {offsets = [0, 80], sizes = [12, 8], strides = [1, 1]} : vector<12x96xf32> to vector<12x8xf32>
    %46 = vector.extract_strided_slice %24 {offsets = [0, 88], sizes = [12, 8], strides = [1, 1]} : vector<12x96xf32> to vector<12x8xf32>
    %47 = vector.shape_cast %43 : vector<12x8xf32> to vector<1x12x8xf32>
    %48 = vector.shape_cast %44 : vector<12x8xf32> to vector<1x12x8xf32>
    %49 = vector.shape_cast %45 : vector<12x8xf32> to vector<1x12x8xf32>
    %50 = vector.shape_cast %46 : vector<12x8xf32> to vector<1x12x8xf32>
    %51 = tpu.concatenate %47, %48, %49, %50 in 0 : vector<1x12x8xf32>, vector<1x12x8xf32>, vector<1x12x8xf32>, vector<1x12x8xf32> -> vector<4x12x8xf32>
    "tpu.trace_start"() <{level = 10 : i32, message = "hqd,hkd->hqk"}> : () -> ()
    %cst_19 = arith.constant dense<0.000000e+00> : vector<4x12x12xf32>
    %52 = tpu.matmul %33, %42, %cst_19 {dimension_numbers = #tpu.dot_dimension_numbers<[2], [2], [1], [1], [0, 0, 0, 1, 1, 1], [0], [0]>} : vector<4x12x8xf32>, vector<4x12x8xf32>, vector<4x12x12xf32> -> vector<4x12x12xf32>
    "tpu.trace_stop"() : () -> ()
    %cst_20 = arith.constant 0.353553385 : f32
    %53 = vector.broadcast %cst_20 : f32 to vector<4x12x12xf32>
    %54 = arith.mulf %52, %53 : vector<4x12x12xf32>
    %55 = arith.addf %54, %17 : vector<4x12x12xf32>
    %cst_21 = arith.constant dense<0xFF800000> : vector<4x12xf32>
    %56 = vector.multi_reduction <maximumf>, %55, %cst_21 [2] : vector<4x12x12xf32> to vector<4x12xf32>
    %57 = vector.shape_cast %56 : vector<4x12xf32> to vector<4x12x1xf32>
    %58 = vector.broadcast %57 : vector<4x12x1xf32> to vector<4x12x12xf32>
    %59 = arith.subf %55, %58 : vector<4x12x12xf32>
    %60 = math.exp %59 : vector<4x12x12xf32>
    %cst_22 = arith.constant dense<0.000000e+00> : vector<4x12xf32>
    %61 = vector.multi_reduction <add>, %60, %cst_22 [2] : vector<4x12x12xf32> to vector<4x12xf32>
    %62 = vector.shape_cast %61 : vector<4x12xf32> to vector<4x12x1xf32>
    %63 = tpu.reciprocal %62 {approx = true} : vector<4x12x1xf32> -> vector<4x12x1xf32>
    %64 = vector.broadcast %63 : vector<4x12x1xf32> to vector<4x12x12xf32>
    %65 = arith.mulf %60, %64 : vector<4x12x12xf32>
    "tpu.trace_start"() <{level = 10 : i32, message = "hqk,hkd->hqd"}> : () -> ()
    %cst_23 = arith.constant dense<0.000000e+00> : vector<4x12x8xf32>
    %66 = tpu.matmul %65, %51, %cst_23 {dimension_numbers = #tpu.dot_dimension_numbers<[2], [1], [1], [2], [0, 0, 0, 1, 1, 2], [0], [0]>} : vector<4x12x12xf32>, vector<4x12x8xf32>, vector<4x12x8xf32> -> vector<4x12x8xf32>
    "tpu.trace_stop"() : () -> ()
    %c0_24 = arith.constant 0 : index
    %c0_25 = arith.constant 0 : index
    %c0_26 = arith.constant 0 : index
    %c0_27 = arith.constant 0 : index
    %67 = vector.load %arg8[%c0_24, %c0_25, %c0_26, %c0_27] : memref<2x4x8x32xf32, #tpu.memory_space<vmem>>, vector<1x4x8x32xf32>
    %68 = vector.shape_cast %67 : vector<1x4x8x32xf32> to vector<4x8x32xf32>
    %cst_28 = arith.constant dense<0.000000e+00> : vector<4x12x32xf32>
    %69 = tpu.matmul %66, %68, %cst_28 {dimension_numbers = #tpu.dot_dimension_numbers<[2], [1], [1], [2], [0, 0, 0, 1, 1, 2], [0], [0]>} : vector<4x12x8xf32>, vector<4x8x32xf32>, vector<4x12x32xf32> -> vector<4x12x32xf32>
    %cst_29 = arith.constant dense<0.000000e+00> : vector<12x32xf32>
    %70 = vector.multi_reduction <add>, %69, %cst_29 [0] : vector<4x12x32xf32> to vector<12x32xf32>
    %c0_30 = arith.constant 0 : index
    %c0_31 = arith.constant 0 : index
    %c0_32 = arith.constant 0 : index
    %71 = vector.load %arg9[%c0_30, %c0_31, %c0_32] : memref<2x1x32xf32, #tpu.memory_space<vmem>>, vector<1x1x32xf32>
    %72 = vector.shape_cast %71 : vector<1x1x32xf32> to vector<1x32xf32>
    %73 = vector.broadcast %72 : vector<1x32xf32> to vector<12x32xf32>
    %74 = arith.addf %70, %73 : vector<12x32xf32>
    %75 = arith.addf %14, %74 : vector<12x32xf32>
    %c0_33 = arith.constant 0 : index
    %c0_34 = arith.constant 0 : index
    %c0_35 = arith.constant 0 : index
    %76 = vector.load %arg14[%c0_33, %c0_34, %c0_35] : memref<2x1x32xf32, #tpu.memory_space<vmem>>, vector<1x1x32xf32>
    %77 = vector.shape_cast %76 : vector<1x1x32xf32> to vector<1x32xf32>
    %c0_36 = arith.constant 0 : index
    %c0_37 = arith.constant 0 : index
    %c0_38 = arith.constant 0 : index
    %78 = vector.load %arg15[%c0_36, %c0_37, %c0_38] : memref<2x1x32xf32, #tpu.memory_space<vmem>>, vector<1x1x32xf32>
    %79 = vector.shape_cast %78 : vector<1x1x32xf32> to vector<1x32xf32>
    %cst_39 = arith.constant dense<0.000000e+00> : vector<12xf32>
    %80 = vector.multi_reduction <add>, %75, %cst_39 [1] : vector<12x32xf32> to vector<12xf32>
    %81 = vector.shape_cast %80 : vector<12xf32> to vector<12x1xf32>
    %cst_40 = arith.constant 3.200000e+01 : f32
    %82 = vector.broadcast %cst_40 : f32 to vector<12x1xf32>
    %83 = arith.divf %81, %82 : vector<12x1xf32>
    %84 = vector.broadcast %83 : vector<12x1xf32> to vector<12x32xf32>
    %85 = arith.subf %75, %84 : vector<12x32xf32>
    %86 = arith.mulf %85, %85 : vector<12x32xf32>
    %cst_41 = arith.constant dense<0.000000e+00> : vector<12xf32>
    %87 = vector.multi_reduction <add>, %86, %cst_41 [1] : vector<12x32xf32> to vector<12xf32>
    %88 = vector.shape_cast %87 : vector<12xf32> to vector<12x1xf32>
    %cst_42 = arith.constant 3.200000e+01 : f32
    %89 = vector.broadcast %cst_42 : f32 to vector<12x1xf32>
    %90 = arith.divf %88, %89 : vector<12x1xf32>
    %cst_43 = arith.constant 9.99999974E-6 : f32
    %91 = vector.broadcast %cst_43 : f32 to vector<12x1xf32>
    %92 = arith.addf %90, %91 : vector<12x1xf32>
    %93 = math.rsqrt %92 : vector<12x1xf32>
    %94 = vector.broadcast %93 : vector<12x1xf32> to vector<12x32xf32>
    %95 = arith.mulf %85, %94 : vector<12x32xf32>
    %96 = vector.broadcast %77 : vector<1x32xf32> to vector<12x32xf32>
    %97 = arith.mulf %95, %96 : vector<12x32xf32>
    %98 = vector.broadcast %79 : vector<1x32xf32> to vector<12x32xf32>
    %99 = arith.addf %97, %98 : vector<12x32xf32>
    %c0_44 = arith.constant 0 : index
    %c0_45 = arith.constant 0 : index
    %c0_46 = arith.constant 0 : index
    %100 = vector.load %arg10[%c0_44, %c0_45, %c0_46] : memref<2x32x512xf32, #tpu.memory_space<vmem>>, vector<1x32x512xf32>
    %101 = vector.shape_cast %100 : vector<1x32x512xf32> to vector<32x512xf32>
    %cst_47 = arith.constant dense<0.000000e+00> : vector<12x512xf32>
    %102 = tpu.matmul %99, %101, %cst_47 {dimension_numbers = #tpu.dot_dimension_numbers<[1], [0], [0], [1], [0, 0, 1, 1], [], []>} : vector<12x32xf32>, vector<32x512xf32>, vector<12x512xf32> -> vector<12x512xf32>
    %c0_48 = arith.constant 0 : index
    %c0_49 = arith.constant 0 : index
    %c0_50 = arith.constant 0 : index
    %103 = vector.load %arg11[%c0_48, %c0_49, %c0_50] : memref<2x1x512xf32, #tpu.memory_space<vmem>>, vector<1x1x512xf32>
    %104 = vector.shape_cast %103 : vector<1x1x512xf32> to vector<1x512xf32>
    %105 = vector.broadcast %104 : vector<1x512xf32> to vector<12x512xf32>
    %106 = arith.addf %102, %105 : vector<12x512xf32>
    %cst_51 = arith.constant 0.000000e+00 : f32
    %107 = vector.broadcast %cst_51 : f32 to vector<12x512xf32>
    %108 = arith.maximumf %106, %107 : vector<12x512xf32>
    %c0_52 = arith.constant 0 : index
    %c0_53 = arith.constant 0 : index
    %c0_54 = arith.constant 0 : index
    %109 = vector.load %arg12[%c0_52, %c0_53, %c0_54] : memref<2x512x32xf32, #tpu.memory_space<vmem>>, vector<1x512x32xf32>
    %110 = vector.shape_cast %109 : vector<1x512x32xf32> to vector<512x32xf32>
    %cst_55 = arith.constant dense<0.000000e+00> : vector<12x32xf32>
    %111 = tpu.matmul %108, %110, %cst_55 {dimension_numbers = #tpu.dot_dimension_numbers<[1], [0], [0], [1], [0, 0, 1, 1], [], []>} : vector<12x512xf32>, vector<512x32xf32>, vector<12x32xf32> -> vector<12x32xf32>
    %c0_56 = arith.constant 0 : index
    %c0_57 = arith.constant 0 : index
    %c0_58 = arith.constant 0 : index
    %112 = vector.load %arg13[%c0_56, %c0_57, %c0_58] : memref<2x1x32xf32, #tpu.memory_space<vmem>>, vector<1x1x32xf32>
    %113 = vector.shape_cast %112 : vector<1x1x32xf32> to vector<1x32xf32>
    %114 = vector.broadcast %113 : vector<1x32xf32> to vector<12x32xf32>
    %115 = arith.addf %111, %114 : vector<12x32xf32>
    %116 = arith.addf %99, %115 : vector<12x32xf32>
    %c0_59 = arith.constant 0 : index
    %c0_60 = arith.constant 0 : index
    %c0_61 = arith.constant 0 : index
    %117 = vector.load %arg16[%c0_59, %c0_60, %c0_61] : memref<2x1x32xf32, #tpu.memory_space<vmem>>, vector<1x1x32xf32>
    %118 = vector.shape_cast %117 : vector<1x1x32xf32> to vector<1x32xf32>
    %c0_62 = arith.constant 0 : index
    %c0_63 = arith.constant 0 : index
    %c0_64 = arith.constant 0 : index
    %119 = vector.load %arg17[%c0_62, %c0_63, %c0_64] : memref<2x1x32xf32, #tpu.memory_space<vmem>>, vector<1x1x32xf32>
    %120 = vector.shape_cast %119 : vector<1x1x32xf32> to vector<1x32xf32>
    %cst_65 = arith.constant dense<0.000000e+00> : vector<12xf32>
    %121 = vector.multi_reduction <add>, %116, %cst_65 [1] : vector<12x32xf32> to vector<12xf32>
    %122 = vector.shape_cast %121 : vector<12xf32> to vector<12x1xf32>
    %cst_66 = arith.constant 3.200000e+01 : f32
    %123 = vector.broadcast %cst_66 : f32 to vector<12x1xf32>
    %124 = arith.divf %122, %123 : vector<12x1xf32>
    %125 = vector.broadcast %124 : vector<12x1xf32> to vector<12x32xf32>
    %126 = arith.subf %116, %125 : vector<12x32xf32>
    %127 = arith.mulf %126, %126 : vector<12x32xf32>
    %cst_67 = arith.constant dense<0.000000e+00> : vector<12xf32>
    %128 = vector.multi_reduction <add>, %127, %cst_67 [1] : vector<12x32xf32> to vector<12xf32>
    %129 = vector.shape_cast %128 : vector<12xf32> to vector<12x1xf32>
    %cst_68 = arith.constant 3.200000e+01 : f32
    %130 = vector.broadcast %cst_68 : f32 to vector<12x1xf32>
    %131 = arith.divf %129, %130 : vector<12x1xf32>
    %cst_69 = arith.constant 9.99999974E-6 : f32
    %132 = vector.broadcast %cst_69 : f32 to vector<12x1xf32>
    %133 = arith.addf %131, %132 : vector<12x1xf32>
    %134 = math.rsqrt %133 : vector<12x1xf32>
    %135 = vector.broadcast %134 : vector<12x1xf32> to vector<12x32xf32>
    %136 = arith.mulf %126, %135 : vector<12x32xf32>
    %137 = vector.broadcast %118 : vector<1x32xf32> to vector<12x32xf32>
    %138 = arith.mulf %136, %137 : vector<12x32xf32>
    %139 = vector.broadcast %120 : vector<1x32xf32> to vector<12x32xf32>
    %140 = arith.addf %138, %139 : vector<12x32xf32>
    %c1 = arith.constant 1 : index
    %c0_70 = arith.constant 0 : index
    %c0_71 = arith.constant 0 : index
    %141 = vector.load %arg6[%c1, %c0_70, %c0_71] : memref<2x32x96xf32, #tpu.memory_space<vmem>>, vector<1x32x96xf32>
    %142 = vector.shape_cast %141 : vector<1x32x96xf32> to vector<32x96xf32>
    %cst_72 = arith.constant dense<0.000000e+00> : vector<12x96xf32>
    %143 = tpu.matmul %140, %142, %cst_72 {dimension_numbers = #tpu.dot_dimension_numbers<[1], [0], [0], [1], [0, 0, 1, 1], [], []>} : vector<12x32xf32>, vector<32x96xf32>, vector<12x96xf32> -> vector<12x96xf32>
    %c1_73 = arith.constant 1 : index
    %c0_74 = arith.constant 0 : index
    %c0_75 = arith.constant 0 : index
    %144 = vector.load %arg7[%c1_73, %c0_74, %c0_75] : memref<2x1x96xf32, #tpu.memory_space<vmem>>, vector<1x1x96xf32>
    %145 = vector.shape_cast %144 : vector<1x1x96xf32> to vector<1x96xf32>
    %146 = vector.broadcast %145 : vector<1x96xf32> to vector<12x96xf32>
    %147 = arith.addf %143, %146 : vector<12x96xf32>
    %148 = vector.extract_strided_slice %147 {offsets = [0, 0], sizes = [12, 8], strides = [1, 1]} : vector<12x96xf32> to vector<12x8xf32>
    %149 = vector.extract_strided_slice %147 {offsets = [0, 8], sizes = [12, 8], strides = [1, 1]} : vector<12x96xf32> to vector<12x8xf32>
    %150 = vector.extract_strided_slice %147 {offsets = [0, 16], sizes = [12, 8], strides = [1, 1]} : vector<12x96xf32> to vector<12x8xf32>
    %151 = vector.extract_strided_slice %147 {offsets = [0, 24], sizes = [12, 8], strides = [1, 1]} : vector<12x96xf32> to vector<12x8xf32>
    %152 = vector.shape_cast %148 : vector<12x8xf32> to vector<1x12x8xf32>
    %153 = vector.shape_cast %149 : vector<12x8xf32> to vector<1x12x8xf32>
    %154 = vector.shape_cast %150 : vector<12x8xf32> to vector<1x12x8xf32>
    %155 = vector.shape_cast %151 : vector<12x8xf32> to vector<1x12x8xf32>
    %156 = tpu.concatenate %152, %153, %154, %155 in 0 : vector<1x12x8xf32>, vector<1x12x8xf32>, vector<1x12x8xf32>, vector<1x12x8xf32> -> vector<4x12x8xf32>
    %157 = vector.extract_strided_slice %147 {offsets = [0, 32], sizes = [12, 8], strides = [1, 1]} : vector<12x96xf32> to vector<12x8xf32>
    %158 = vector.extract_strided_slice %147 {offsets = [0, 40], sizes = [12, 8], strides = [1, 1]} : vector<12x96xf32> to vector<12x8xf32>
    %159 = vector.extract_strided_slice %147 {offsets = [0, 48], sizes = [12, 8], strides = [1, 1]} : vector<12x96xf32> to vector<12x8xf32>
    %160 = vector.extract_strided_slice %147 {offsets = [0, 56], sizes = [12, 8], strides = [1, 1]} : vector<12x96xf32> to vector<12x8xf32>
    %161 = vector.shape_cast %157 : vector<12x8xf32> to vector<1x12x8xf32>
    %162 = vector.shape_cast %158 : vector<12x8xf32> to vector<1x12x8xf32>
    %163 = vector.shape_cast %159 : vector<12x8xf32> to vector<1x12x8xf32>
    %164 = vector.shape_cast %160 : vector<12x8xf32> to vector<1x12x8xf32>
    %165 = tpu.concatenate %161, %162, %163, %164 in 0 : vector<1x12x8xf32>, vector<1x12x8xf32>, vector<1x12x8xf32>, vector<1x12x8xf32> -> vector<4x12x8xf32>
    %166 = vector.extract_strided_slice %147 {offsets = [0, 64], sizes = [12, 8], strides = [1, 1]} : vector<12x96xf32> to vector<12x8xf32>
    %167 = vector.extract_strided_slice %147 {offsets = [0, 72], sizes = [12, 8], strides = [1, 1]} : vector<12x96xf32> to vector<12x8xf32>
    %168 = vector.extract_strided_slice %147 {offsets = [0, 80], sizes = [12, 8], strides = [1, 1]} : vector<12x96xf32> to vector<12x8xf32>
    %169 = vector.extract_strided_slice %147 {offsets = [0, 88], sizes = [12, 8], strides = [1, 1]} : vector<12x96xf32> to vector<12x8xf32>
    %170 = vector.shape_cast %166 : vector<12x8xf32> to vector<1x12x8xf32>
    %171 = vector.shape_cast %167 : vector<12x8xf32> to vector<1x12x8xf32>
    %172 = vector.shape_cast %168 : vector<12x8xf32> to vector<1x12x8xf32>
    %173 = vector.shape_cast %169 : vector<12x8xf32> to vector<1x12x8xf32>
    %174 = tpu.concatenate %170, %171, %172, %173 in 0 : vector<1x12x8xf32>, vector<1x12x8xf32>, vector<1x12x8xf32>, vector<1x12x8xf32> -> vector<4x12x8xf32>
    "tpu.trace_start"() <{level = 10 : i32, message = "hqd,hkd->hqk"}> : () -> ()
    %cst_76 = arith.constant dense<0.000000e+00> : vector<4x12x12xf32>
    %175 = tpu.matmul %156, %165, %cst_76 {dimension_numbers = #tpu.dot_dimension_numbers<[2], [2], [1], [1], [0, 0, 0, 1, 1, 1], [0], [0]>} : vector<4x12x8xf32>, vector<4x12x8xf32>, vector<4x12x12xf32> -> vector<4x12x12xf32>
    "tpu.trace_stop"() : () -> ()
    %cst_77 = arith.constant 0.353553385 : f32
    %176 = vector.broadcast %cst_77 : f32 to vector<4x12x12xf32>
    %177 = arith.mulf %175, %176 : vector<4x12x12xf32>
    %178 = arith.addf %177, %17 : vector<4x12x12xf32>
    %cst_78 = arith.constant dense<0xFF800000> : vector<4x12xf32>
    %179 = vector.multi_reduction <maximumf>, %178, %cst_78 [2] : vector<4x12x12xf32> to vector<4x12xf32>
    %180 = vector.shape_cast %179 : vector<4x12xf32> to vector<4x12x1xf32>
    %181 = vector.broadcast %180 : vector<4x12x1xf32> to vector<4x12x12xf32>
    %182 = arith.subf %178, %181 : vector<4x12x12xf32>
    %183 = math.exp %182 : vector<4x12x12xf32>
    %cst_79 = arith.constant dense<0.000000e+00> : vector<4x12xf32>
    %184 = vector.multi_reduction <add>, %183, %cst_79 [2] : vector<4x12x12xf32> to vector<4x12xf32>
    %185 = vector.shape_cast %184 : vector<4x12xf32> to vector<4x12x1xf32>
    %186 = tpu.reciprocal %185 {approx = true} : vector<4x12x1xf32> -> vector<4x12x1xf32>
    %187 = vector.broadcast %186 : vector<4x12x1xf32> to vector<4x12x12xf32>
    %188 = arith.mulf %183, %187 : vector<4x12x12xf32>
    "tpu.trace_start"() <{level = 10 : i32, message = "hqk,hkd->hqd"}> : () -> ()
    %cst_80 = arith.constant dense<0.000000e+00> : vector<4x12x8xf32>
    %189 = tpu.matmul %188, %174, %cst_80 {dimension_numbers = #tpu.dot_dimension_numbers<[2], [1], [1], [2], [0, 0, 0, 1, 1, 2], [0], [0]>} : vector<4x12x12xf32>, vector<4x12x8xf32>, vector<4x12x8xf32> -> vector<4x12x8xf32>
    "tpu.trace_stop"() : () -> ()
    %c1_81 = arith.constant 1 : index
    %c0_82 = arith.constant 0 : index
    %c0_83 = arith.constant 0 : index
    %c0_84 = arith.constant 0 : index
    %190 = vector.load %arg8[%c1_81, %c0_82, %c0_83, %c0_84] : memref<2x4x8x32xf32, #tpu.memory_space<vmem>>, vector<1x4x8x32xf32>
    %191 = vector.shape_cast %190 : vector<1x4x8x32xf32> to vector<4x8x32xf32>
    %cst_85 = arith.constant dense<0.000000e+00> : vector<4x12x32xf32>
    %192 = tpu.matmul %189, %191, %cst_85 {dimension_numbers = #tpu.dot_dimension_numbers<[2], [1], [1], [2], [0, 0, 0, 1, 1, 2], [0], [0]>} : vector<4x12x8xf32>, vector<4x8x32xf32>, vector<4x12x32xf32> -> vector<4x12x32xf32>
    %cst_86 = arith.constant dense<0.000000e+00> : vector<12x32xf32>
    %193 = vector.multi_reduction <add>, %192, %cst_86 [0] : vector<4x12x32xf32> to vector<12x32xf32>
    %c1_87 = arith.constant 1 : index
    %c0_88 = arith.constant 0 : index
    %c0_89 = arith.constant 0 : index
    %194 = vector.load %arg9[%c1_87, %c0_88, %c0_89] : memref<2x1x32xf32, #tpu.memory_space<vmem>>, vector<1x1x32xf32>
    %195 = vector.shape_cast %194 : vector<1x1x32xf32> to vector<1x32xf32>
    %196 = vector.broadcast %195 : vector<1x32xf32> to vector<12x32xf32>
    %197 = arith.addf %193, %196 : vector<12x32xf32>
    %198 = arith.addf %140, %197 : vector<12x32xf32>
    %c1_90 = arith.constant 1 : index
    %c0_91 = arith.constant 0 : index
    %c0_92 = arith.constant 0 : index
    %199 = vector.load %arg14[%c1_90, %c0_91, %c0_92] : memref<2x1x32xf32, #tpu.memory_space<vmem>>, vector<1x1x32xf32>
    %200 = vector.shape_cast %199 : vector<1x1x32xf32> to vector<1x32xf32>
    %c1_93 = arith.constant 1 : index
    %c0_94 = arith.constant 0 : index
    %c0_95 = arith.constant 0 : index
    %201 = vector.load %arg15[%c1_93, %c0_94, %c0_95] : memref<2x1x32xf32, #tpu.memory_space<vmem>>, vector<1x1x32xf32>
    %202 = vector.shape_cast %201 : vector<1x1x32xf32> to vector<1x32xf32>
    %cst_96 = arith.constant dense<0.000000e+00> : vector<12xf32>
    %203 = vector.multi_reduction <add>, %198, %cst_96 [1] : vector<12x32xf32> to vector<12xf32>
    %204 = vector.shape_cast %203 : vector<12xf32> to vector<12x1xf32>
    %cst_97 = arith.constant 3.200000e+01 : f32
    %205 = vector.broadcast %cst_97 : f32 to vector<12x1xf32>
    %206 = arith.divf %204, %205 : vector<12x1xf32>
    %207 = vector.broadcast %206 : vector<12x1xf32> to vector<12x32xf32>
    %208 = arith.subf %198, %207 : vector<12x32xf32>
    %209 = arith.mulf %208, %208 : vector<12x32xf32>
    %cst_98 = arith.constant dense<0.000000e+00> : vector<12xf32>
    %210 = vector.multi_reduction <add>, %209, %cst_98 [1] : vector<12x32xf32> to vector<12xf32>
    %211 = vector.shape_cast %210 : vector<12xf32> to vector<12x1xf32>
    %cst_99 = arith.constant 3.200000e+01 : f32
    %212 = vector.broadcast %cst_99 : f32 to vector<12x1xf32>
    %213 = arith.divf %211, %212 : vector<12x1xf32>
    %cst_100 = arith.constant 9.99999974E-6 : f32
    %214 = vector.broadcast %cst_100 : f32 to vector<12x1xf32>
    %215 = arith.addf %213, %214 : vector<12x1xf32>
    %216 = math.rsqrt %215 : vector<12x1xf32>
    %217 = vector.broadcast %216 : vector<12x1xf32> to vector<12x32xf32>
    %218 = arith.mulf %208, %217 : vector<12x32xf32>
    %219 = vector.broadcast %200 : vector<1x32xf32> to vector<12x32xf32>
    %220 = arith.mulf %218, %219 : vector<12x32xf32>
    %221 = vector.broadcast %202 : vector<1x32xf32> to vector<12x32xf32>
    %222 = arith.addf %220, %221 : vector<12x32xf32>
    %c1_101 = arith.constant 1 : index
    %c0_102 = arith.constant 0 : index
    %c0_103 = arith.constant 0 : index
    %223 = vector.load %arg10[%c1_101, %c0_102, %c0_103] : memref<2x32x512xf32, #tpu.memory_space<vmem>>, vector<1x32x512xf32>
    %224 = vector.shape_cast %223 : vector<1x32x512xf32> to vector<32x512xf32>
    %cst_104 = arith.constant dense<0.000000e+00> : vector<12x512xf32>
    %225 = tpu.matmul %222, %224, %cst_104 {dimension_numbers = #tpu.dot_dimension_numbers<[1], [0], [0], [1], [0, 0, 1, 1], [], []>} : vector<12x32xf32>, vector<32x512xf32>, vector<12x512xf32> -> vector<12x512xf32>
    %c1_105 = arith.constant 1 : index
    %c0_106 = arith.constant 0 : index
    %c0_107 = arith.constant 0 : index
    %226 = vector.load %arg11[%c1_105, %c0_106, %c0_107] : memref<2x1x512xf32, #tpu.memory_space<vmem>>, vector<1x1x512xf32>
    %227 = vector.shape_cast %226 : vector<1x1x512xf32> to vector<1x512xf32>
    %228 = vector.broadcast %227 : vector<1x512xf32> to vector<12x512xf32>
    %229 = arith.addf %225, %228 : vector<12x512xf32>
    %cst_108 = arith.constant 0.000000e+00 : f32
    %230 = vector.broadcast %cst_108 : f32 to vector<12x512xf32>
    %231 = arith.maximumf %229, %230 : vector<12x512xf32>
    %c1_109 = arith.constant 1 : index
    %c0_110 = arith.constant 0 : index
    %c0_111 = arith.constant 0 : index
    %232 = vector.load %arg12[%c1_109, %c0_110, %c0_111] : memref<2x512x32xf32, #tpu.memory_space<vmem>>, vector<1x512x32xf32>
    %233 = vector.shape_cast %232 : vector<1x512x32xf32> to vector<512x32xf32>
    %cst_112 = arith.constant dense<0.000000e+00> : vector<12x32xf32>
    %234 = tpu.matmul %231, %233, %cst_112 {dimension_numbers = #tpu.dot_dimension_numbers<[1], [0], [0], [1], [0, 0, 1, 1], [], []>} : vector<12x512xf32>, vector<512x32xf32>, vector<12x32xf32> -> vector<12x32xf32>
    %c1_113 = arith.constant 1 : index
    %c0_114 = arith.constant 0 : index
    %c0_115 = arith.constant 0 : index
    %235 = vector.load %arg13[%c1_113, %c0_114, %c0_115] : memref<2x1x32xf32, #tpu.memory_space<vmem>>, vector<1x1x32xf32>
    %236 = vector.shape_cast %235 : vector<1x1x32xf32> to vector<1x32xf32>
    %237 = vector.broadcast %236 : vector<1x32xf32> to vector<12x32xf32>
    %238 = arith.addf %234, %237 : vector<12x32xf32>
    %239 = arith.addf %222, %238 : vector<12x32xf32>
    %c1_116 = arith.constant 1 : index
    %c0_117 = arith.constant 0 : index
    %c0_118 = arith.constant 0 : index
    %240 = vector.load %arg16[%c1_116, %c0_117, %c0_118] : memref<2x1x32xf32, #tpu.memory_space<vmem>>, vector<1x1x32xf32>
    %241 = vector.shape_cast %240 : vector<1x1x32xf32> to vector<1x32xf32>
    %c1_119 = arith.constant 1 : index
    %c0_120 = arith.constant 0 : index
    %c0_121 = arith.constant 0 : index
    %242 = vector.load %arg17[%c1_119, %c0_120, %c0_121] : memref<2x1x32xf32, #tpu.memory_space<vmem>>, vector<1x1x32xf32>
    %243 = vector.shape_cast %242 : vector<1x1x32xf32> to vector<1x32xf32>
    %cst_122 = arith.constant dense<0.000000e+00> : vector<12xf32>
    %244 = vector.multi_reduction <add>, %239, %cst_122 [1] : vector<12x32xf32> to vector<12xf32>
    %245 = vector.shape_cast %244 : vector<12xf32> to vector<12x1xf32>
    %cst_123 = arith.constant 3.200000e+01 : f32
    %246 = vector.broadcast %cst_123 : f32 to vector<12x1xf32>
    %247 = arith.divf %245, %246 : vector<12x1xf32>
    %248 = vector.broadcast %247 : vector<12x1xf32> to vector<12x32xf32>
    %249 = arith.subf %239, %248 : vector<12x32xf32>
    %250 = arith.mulf %249, %249 : vector<12x32xf32>
    %cst_124 = arith.constant dense<0.000000e+00> : vector<12xf32>
    %251 = vector.multi_reduction <add>, %250, %cst_124 [1] : vector<12x32xf32> to vector<12xf32>
    %252 = vector.shape_cast %251 : vector<12xf32> to vector<12x1xf32>
    %cst_125 = arith.constant 3.200000e+01 : f32
    %253 = vector.broadcast %cst_125 : f32 to vector<12x1xf32>
    %254 = arith.divf %252, %253 : vector<12x1xf32>
    %cst_126 = arith.constant 9.99999974E-6 : f32
    %255 = vector.broadcast %cst_126 : f32 to vector<12x1xf32>
    %256 = arith.addf %254, %255 : vector<12x1xf32>
    %257 = math.rsqrt %256 : vector<12x1xf32>
    %258 = vector.broadcast %257 : vector<12x1xf32> to vector<12x32xf32>
    %259 = arith.mulf %249, %258 : vector<12x32xf32>
    %260 = vector.broadcast %241 : vector<1x32xf32> to vector<12x32xf32>
    %261 = arith.mulf %259, %260 : vector<12x32xf32>
    %262 = vector.broadcast %243 : vector<1x32xf32> to vector<12x32xf32>
    %263 = arith.addf %261, %262 : vector<12x32xf32>
    %264 = vector.extract_strided_slice %263 {offsets = [0, 0], sizes = [4, 32], strides = [1, 1]} : vector<12x32xf32> to vector<4x32xf32>
    %265 = vector.extract_strided_slice %263 {offsets = [4, 0], sizes = [4, 32], strides = [1, 1]} : vector<12x32xf32> to vector<4x32xf32>
    %266 = arith.addf %264, %265 : vector<4x32xf32>
    %267 = vector.extract_strided_slice %263 {offsets = [8, 0], sizes = [4, 32], strides = [1, 1]} : vector<12x32xf32> to vector<4x32xf32>
    %268 = arith.addf %266, %267 : vector<4x32xf32>
    %cst_127 = arith.constant 0.333333343 : f32
    %269 = vector.broadcast %cst_127 : f32 to vector<4x32xf32>
    %270 = arith.mulf %268, %269 : vector<4x32xf32>
    %c0_128 = arith.constant 0 : index
    %c0_129 = arith.constant 0 : index
    %271 = vector.load %arg18[%c0_128, %c0_129] : memref<32x32xf32, #tpu.memory_space<vmem>>, vector<32x32xf32>
    %cst_130 = arith.constant dense<0.000000e+00> : vector<4x32xf32>
    %272 = tpu.matmul %270, %271, %cst_130 {dimension_numbers = #tpu.dot_dimension_numbers<[1], [0], [0], [1], [0, 0, 1, 1], [], []>} : vector<4x32xf32>, vector<32x32xf32>, vector<4x32xf32> -> vector<4x32xf32>
    %c0_131 = arith.constant 0 : index
    %c0_132 = arith.constant 0 : index
    %273 = vector.load %arg19[%c0_131, %c0_132] : memref<1x32xf32, #tpu.memory_space<vmem>>, vector<1x32xf32>
    %274 = vector.broadcast %273 : vector<1x32xf32> to vector<4x32xf32>
    %275 = arith.addf %272, %274 : vector<4x32xf32>
    %276 = vector.extract_strided_slice %275 {offsets = [0, 0], sizes = [1, 32], strides = [1, 1]} : vector<4x32xf32> to vector<1x32xf32>
    %277 = vector.extract_strided_slice %275 {offsets = [1, 0], sizes = [1, 32], strides = [1, 1]} : vector<4x32xf32> to vector<1x32xf32>
    %278 = vector.extract_strided_slice %275 {offsets = [2, 0], sizes = [1, 32], strides = [1, 1]} : vector<4x32xf32> to vector<1x32xf32>
    %279 = vector.extract_strided_slice %275 {offsets = [3, 0], sizes = [1, 32], strides = [1, 1]} : vector<4x32xf32> to vector<1x32xf32>
    %280 = tpu.concatenate %276, %277, %278, %279 in 1 : vector<1x32xf32>, vector<1x32xf32>, vector<1x32xf32>, vector<1x32xf32> -> vector<1x128xf32>
    %c0_133 = arith.constant 0 : index
    %c0_134 = arith.constant 0 : index
    %281 = vector.load %arg20[%c0_133, %c0_134] : memref<1x128xf32, #tpu.memory_space<vmem>>, vector<1x128xf32>
    tpu.vector_store %arg20[%c0_133, %c0_134], %280 {strides = array<i32>} : memref<1x128xf32, #tpu.memory_space<vmem>>, vector<1x128xf32>,
    return
  }
}

</mosaic_0001>

<bundles_post_ra>
// kernel: tpu_custom_call.1
= control target key start
LH: loop header
LB: loop body
LE: loop exit
PB: predicated region body
PF: predicated region fallthrough
CT: control target
= control target key end

     0   :  { %s3756_s0 = inlined_call_operand.vmem [shape: s32[12,1], index: 0, kind: input, shape index: {}]   ;;  %s3757_s1 = inlined_call_operand.vmem [shape: f32[12,6], index: 1, kind: input, shape index: {}]   ;;  %s3758_s2 = inlined_call_operand.vmem [shape: f32[12,12], index: 2, kind: input, shape index: {}]   ;;  %s3759_s3 = inlined_call_operand.vmem [shape: f32[32,32], index: 3, kind: input, shape index: {}]   ;;  %s3760_s4 = inlined_call_operand.vmem [shape: f32[6,32], index: 4, kind: input, shape index: {}]   ;;  %s3761_s5 = inlined_call_operand.vmem [shape: f32[1,32], index: 5, kind: input, shape index: {}]   ;;  %s3762_s6 = inlined_call_operand.vmem [shape: f32[2,32,96], index: 6, kind: input, shape index: {}]   ;;  %s3763_s7 = inlined_call_operand.vmem [shape: f32[2,1,96], index: 7, kind: input, shape index: {}]   ;;  %s3764_s8 = inlined_call_operand.vmem [shape: f32[2,4,8,32], index: 8, kind: input, shape index: {}]   ;;  %s3765_s9 = inlined_call_operand.vmem [shape: f32[2,1,32], index: 9, kind: input, shape index: {}]   ;;  %s3766_s10 = inlined_call_operand.vmem [shape: f32[2,32,512], index: 10, kind: input, shape index: {}]   ;;  %s3767_s11 = inlined_call_operand.vmem [shape: f32[2,1,512], index: 11, kind: input, shape index: {}]   ;;  %s3768_s12 = inlined_call_operand.vmem [shape: f32[2,512,32], index: 12, kind: input, shape index: {}]   ;;  %s3769_s13 = inlined_call_operand.vmem [shape: f32[2,1,32], index: 13, kind: input, shape index: {}]   ;;  %s3770_s14 = inlined_call_operand.vmem [shape: f32[2,1,32], index: 14, kind: input, shape index: {}]   ;;  %s3771_s15 = inlined_call_operand.vmem [shape: f32[2,1,32], index: 15, kind: input, shape index: {}]   ;;  %s3772_s16 = inlined_call_operand.vmem [shape: f32[2,1,32], index: 16, kind: input, shape index: {}]   ;;  %s3773_s17 = inlined_call_operand.vmem [shape: f32[2,1,32], index: 17, kind: input, shape index: {}]   ;;  %s3774_s18 = inlined_call_operand.vmem [shape: f32[32,32], index: 18, kind: input, shape index: {}]   ;;  %s3775_s19 = inlined_call_operand.vmem [shape: f32[1,32], index: 19, kind: input, shape index: {}]   ;;  %s3776_s20 = inlined_call_operand.hbm [shape: f32[1,128], index: 20, kind: output, shape index: {}]  }
   0x1   :  { %3782 = sst [smem:[#allocation5_spill]] %s3756_s0 }
   0x2   :  { %3783 = sst [smem:[#allocation6_spill]] %s3757_s1 }
   0x3   :  { %3784 = sst [smem:[#allocation7_spill]] %s3758_s2 }
   0x4   :  { %3785 = sst [smem:[#allocation8_spill]] %s3759_s3 }
   0x5   :  { %3786 = sst [smem:[#allocation9_spill]] %s3760_s4 }
   0x6   :  { %3787 = sst [smem:[#allocation10_spill]] %s3769_s13 }
   0x7   :  { %s3788_s23 = sld [smem:[#allocation5_spill]]  ;;  %vm100_vm0 = vcmask 1045504   ;;  %v2582_v2 = vmov 0  }
   0x8   :  { %s3789_s13 = sld [smem:[#allocation8_spill]]  ;;  %2435 = vset.pattern.permute.xlu0 %v2582_v2 }
   0x9   :  { %s3790_s28 = sld [smem:[#allocation9_spill]] }
   0xd   :  { %v66_v0 = vld [vmem:[%s3788_s23] sm:$0xff]  ;;  %v67_v6 = vld [vmem:[%s3788_s23 + $0x8] sm:$0xf] }
   0xe   :  { %v85_v1 = vld [vmem:[%s3789_s13 + $0x18] sm:$0xff]  ;;  %v84_v3 = vld [vmem:[%s3789_s13 + $0x10] sm:$0xff]  ;;  %71 = vperm.xlu0 %2435, %v66_v0   ;;  %v83_v5 = vld [vmem:[%s3789_s13 + $0x8] sm:$0xff] }
   0xf   :  { %146 = vmatpush.msra.mxu1 %v85_v1  ;;  %v88_v4 = vld [vmem:[%s3790_s28] sm:$0x3f] }
  0x10   :  { %2231 = vmatpush.msk.msra.mxu0 %vm100_vm0, %v88_v4 }
  0x11   :  { %147 = vmatpush.msra.mxu1 %v84_v3 }
  0x13   :  { %148 = vmatpush.msra.mxu1 %v83_v5 }
  0x14   :  { %25 = vsyncpa [#allocation3], 0  ;;  %s3791_s22 = sld [smem:[#allocation6_spill]]  ;;  %vm93_vm1 = vcmask 48128   ;;  %v82_v8 = vld [vmem:[%s3789_s13] sm:$0xff]  ;;  %v162_v10 = vld [vmem:[%s3762_s6 + $0x18] sm:$0xff]  ;;  %v68_v11 = vlaneseq }
  0x15   :  { %149 = vmatpush.msra.mxu1 %v82_v8  ;;  %185 = vmatpush.msra.mxu2 %v162_v10  ;;  %vm127_vm2 = vcmask 261120   ;;  %v2583_v14 = vmov 0.0   ;;  %v161_v18 = vld [vmem:[%s3762_s6 + $0x10] sm:$0xff]  ;;  %v160_v19 = vld [vmem:[%s3762_s6 + $0x8] sm:$0xff]  ;;  %v159_v20 = vld [vmem:[%s3762_s6] sm:$0xff]  ;;  %s2585_s24 = smov 96  }
  0x16   :  { %74 = vperm.xlu0 %2435, %v67_v6   ;;  %v69_v12 = vand.u32 127, %v68_v11  ;;  %v2456_v22 = vld [vmem:[%s3761_s5] ss:$0 sm:$0xff]  ;;  %s2584_s5 = smov 120   ;;  %s2586_s2 = smov 104   ;;  %vm214_vm5 = vcmask 64512  }
  0x17   :  { %186 = vmatpush.msra.mxu2 %v161_v18  ;;  %v2457_v30 = vld [vmem:[%s3763_s7] ss:$0 sm:$0xff]  ;;  %s2587_s25 = smov 112   ;;  %s2588_s3 = smov 64   ;;  %vm468_vm6 = vcmask 1043456   ;;  %vm367_vm7 = vcmask 97280  }
  0x18   :  { %s3792_s13 = sld [smem:[#allocation7_spill]]  ;;  %vm371_vm8 = vcmask 93184   ;;  %vm729_vm9 = vcmask 257024   ;;  %s2591_s0 = smov [#allocation2]  }
  0x19   :  { %187 = vmatpush.msra.mxu2 %v160_v19  ;;  %s3793_s30 = sld [smem:[#allocation10_spill]]  ;;  %s2220_s1 = sshll.u32 %s3776_s20, 4  ;;  %s2221_s1 = int_to_ptr.hbm [resolvable:$true] %s2220_s1 }
  0x1a   :  { %v86_v7 = vld [vmem:[%s3791_s22] sm:$0xff]  ;;  %v87_v9 = vld [vmem:[%s3791_s22 + $0x8] sm:$0xf] }
  0x1b   :  { %2232 = vmatmul.msk.f32.vlgmr.msra.gmra.mxu0 %vm93_vm1, %v86_v7  ;;  %188 = vmatpush.msra.mxu2 %v159_v20 }
  0x1e   :  { %v157_v52 = vld [vmem:[%s3792_s13] sm:$0xff]  ;;  %v158_v59 = vld [vmem:[%s3792_s13 + $0x8] sm:$0xf] }
  0x23   :  { %2233 = vmatmul.msk.f32.gmra.mxu0 %vm93_vm1, %v87_v9 }
  0x80   :  { %v72_v13 = vpop.permute.xlu0 %71 }
  0x81   :  { %vm76_vm3 = vcmp.eq.s32.totalorder %v72_v13, %v69_v12 }
  0x82   :  { %v2229_v15 = vsel %vm76_vm3, 1.0, %v2583_v14 }
  0x83   :  { %2234 = vmatmul.msk.f32.vlgmr.msra.gmra.mxu1 %vm127_vm2, %v2229_v15 }
  0x88   :  { %v75_v16 = vpop.permute.xlu0 %74 }
  0x89   :  { %vm77_vm4 = vcmp.eq.s32.totalorder %v75_v16, %v69_v12 }
  0x8a   :  { %v2230_v17 = vsel %vm77_vm4, 1.0, %v2583_v14 }
  0x8b   :  { %2235 = vmatmul.msk.f32.gmra.mxu1 %vm127_vm2, %v2230_v17 }
  0x98   :  { %v121_v21 = vpop.f32.mrf.mxu0 }
  0x99   :  { %v122_v23 = vadd.f32 %v2456_v22, %v121_v21 }
  0xa0   :  { %v124_v26 = vpop.f32.mrf.mxu0 }
  0xa1   :  { %v125_v27 = vadd.f32 %v2456_v22, %v124_v26 }
 0x100   :  { %v151_v24 = vpop.f32.mrf.mxu1 }
 0x101   :  { %v2741_v25 = vadd.f32 %v151_v24, %v122_v23 }
 0x103   :  { %2236 = vmatmul.msk.f32.vlgmr.msra.gmra.mxu2 %vm127_vm2, %v2741_v25 }
 0x108   :  { %v154_v28 = vpop.f32.mrf.mxu1 }
 0x109   :  { %v2745_v29 = vadd.f32 %v154_v28, %v125_v27 }
 0x10b   :  { %2237 = vmatmul.msk.f32.gmra.mxu2 %vm127_vm2, %v2745_v29 }
 0x186   :  { %v190_v31 = vpop.f32.mrf.mxu2 }
 0x187   :  { %v191_v32 = vadd.f32 %v2457_v30, %v190_v31 }
 0x189   :  { %198 = vrot.lane.b32.xlu0 %v191_v32, %s2584_s5 }
 0x18e   :  { %v193_v33 = vpop.f32.mrf.mxu2 }
 0x18f   :  { %v194_v34 = vadd.f32 %v2457_v30, %v193_v33 }
 0x191   :  { %210 = vrot.lane.b32.xlu0 %v191_v32, %s2585_s24  ;;  %200 = vrot.lane.b32.xlu2 %v194_v34, %s2584_s5 }
 0x192   :  { %208 = vrot.lane.b32.xlu1 %v194_v34, %s2586_s2 }
 0x199   :  { %204 = vrot.lane.b32.xlu2 %v194_v34, %s2587_s25 }
 0x19a   :  { %206 = vrot.lane.b32.xlu1 %v191_v32, %s2586_s2 }
 0x1a1   :  { %212 = vrot.lane.b32.xlu2 %v194_v34, %s2585_s24 }
 0x1a2   :  { %202 = vrot.lane.b32.xlu1 %v191_v32, %s2587_s25 }
 0x1eb   :  { %v2760_v35 = vpop.permute.xlu2 %200 }
 0x1ec   :  { %248 = vrot.lane.b32.xlu0 %v2760_v35, %s2585_s24 }
 0x1f3   :  { %v2764_v36 = vpop.permute.xlu2 %204 }
 0x1fb   :  { %v213_v37 = vpop.permute.xlu2 %212  ;;  %v2766_v38 = vpop.permute.xlu0 %198 }
 0x1fc   :  { %2238 = vmatpush.xpose.msk.msra.mxu3 %vm214_vm5, %v213_v37 }
 0x203   :  { %v211_v39 = vpop.permute.xlu0 %210 }
 0x204   :  { %v2769_v40 = vpop.permute.xlu1 %208  ;;  %2239 = vmatpush.xpose.msk.msra.mxu3 %vm214_vm5, %v211_v39 }
 0x205   :  { %318 = vrot.lane.b32.xlu1 %v2769_v40, %s2585_s24 }
 0x207   :  { %2240 = vmatmul.msk.f32.vlgmr.msra.gmra.mxu3 %vm214_vm5, %v191_v32 }
 0x20c   :  { %v207_v41 = vpop.permute.xlu1 %206 }
 0x20d   :  { %283 = vrot.lane.b32.xlu1 %v2764_v36, %s2585_s24  ;;  %316 = vrot.lane.b32.xlu2 %v207_v41, %s2585_s24  ;;  %v2436_v43 = vpack.i.bf16 %v207_v41, %v191_v32 }
 0x20f   :  { %2241 = vmatmul.msk.f32.gmra.mxu3 %vm214_vm5, %v194_v34 }
 0x214   :  { %v2779_v42 = vpop.permute.xlu1 %202 }
 0x215   :  { %459 = vrot.lane.b32.xlu1 %v194_v34, %s2588_s3  ;;  %281 = vrot.lane.b32.xlu0 %v2779_v42, %s2585_s24 }
 0x216   :  { %246 = vrot.lane.b32.xlu2 %v2766_v38, %s2585_s24 }
 0x21d   :  { %2437 = vrot.lane.b32.xlu0 %v2436_v43, %s2588_s3 }
 0x25e   :  { %v249_v44 = vpop.permute.xlu0 %248 }
 0x25f   :  { %2242 = vmatpush.xpose.msk.msrb.mxu0 %vm214_vm5, %v249_v44 }
 0x267   :  { %v317_v45 = vpop.permute.xlu2 %316 }
 0x270   :  { %v247_v46 = vpop.permute.xlu2 %246 }
 0x271   :  { %2243 = vmatpush.xpose.msk.msrb.mxu0 %vm214_vm5, %v247_v46 }
 0x274   :  { %2244 = vmatmul.msk.f32.vlgmr.msrb.gmra.mxu0 %vm214_vm5, %v2766_v38 }
 0x277   :  { %v319_v47 = vpop.permute.xlu1 %318 }
 0x278   :  { %2250 = vmatpush.xpose.msk.msrb.mxu2 %vm214_vm5, %v319_v47 }
 0x27c   :  { %2245 = vmatmul.msk.f32.gmra.mxu0 %vm214_vm5, %v2760_v35  ;;  %2251 = vmatpush.xpose.msk.msrb.mxu2 %vm214_vm5, %v317_v45 }
 0x27f   :  { %2252 = vmatmul.msk.f32.vlgmr.msrb.gmra.mxu2 %vm214_vm5, %v207_v41  ;;  %v284_v48 = vpop.permute.xlu1 %283 }
 0x280   :  { %2246 = vmatpush.xpose.msk.msrb.mxu1 %vm214_vm5, %v284_v48 }
 0x287   :  { %2253 = vmatmul.msk.f32.gmra.mxu2 %vm214_vm5, %v2769_v40  ;;  %v460_v49 = vpop.permute.xlu1 %459  ;;  %v282_v50 = vpop.permute.xlu0 %281 }
 0x288   :  { %2247 = vmatpush.xpose.msk.msrb.mxu1 %vm214_vm5, %v282_v50  ;;  %2254 = vmatpush.msk.msrb.mxu3 %vm468_vm6, %v460_v49 }
 0x28a   :  { %v240_v51 = vpop.f32.mrf.mxu3 }
 0x28b   :  { %v351_v53 = vmul.f32 0.35355338, %v240_v51  ;;  %2248 = vmatmul.msk.f32.vlgmr.msrb.gmra.mxu1 %vm214_vm5, %v2779_v42 }
 0x28d   :  { %v359_v54 = vadd.f32 %v351_v53, %v157_v52 }
 0x28f   :  { %v2806_v55 = vpop.permute.xlu0 %2437  ;;  %v368_v56 = vsel %vm367_vm7, %v359_v54, -inf }
 0x290   :  { %369 = vmax.xlane.f32.xlu1 %v368_v56  ;;  %v2439_v57 = vunpack.i.l.bf16 %v2806_v55 }
 0x292   :  { %486 = vmatpush.msrb.mxu3 %v2439_v57  ;;  %v243_v58 = vpop.f32.mrf.mxu3 }
 0x293   :  { %v352_v60 = vmul.f32 0.35355338, %v243_v58  ;;  %2249 = vmatmul.msk.f32.gmra.mxu1 %vm214_vm5, %v2764_v36 }
 0x295   :  { %v360_v61 = vadd.f32 %v352_v60, %v158_v59 }
 0x297   :  { %v372_v62 = vsel %vm371_vm8, %v360_v61, -inf }
 0x298   :  { %373 = vmax.xlane.f32.xlu0 %v372_v62 }
 0x2f1   :  { %v275_v63 = vpop.f32.mrf.mxu0 }
 0x2f2   :  { %v353_v0 = vmul.f32 0.35355338, %v275_v63 }
 0x2f4   :  { %v361_v1 = vadd.f32 %v353_v0, %v157_v52 }
 0x2f6   :  { %v375_v2 = vsel %vm367_vm7, %v361_v1, -inf }
 0x2f7   :  { %376 = vmax.xlane.f32.xlu2 %v375_v2 }
 0x2f9   :  { %v278_v3 = vpop.f32.mrf.mxu0 }
 0x2fa   :  { %v354_v4 = vmul.f32 0.35355338, %v278_v3 }
 0x2fc   :  { %v362_v5 = vadd.f32 %v354_v4, %v158_v59 }
 0x2fe   :  { %v378_v6 = vsel %vm371_vm8, %v362_v5, -inf }
 0x2ff   :  { %379 = vmax.xlane.f32.xlu0 %v378_v6 }
 0x302   :  { %v345_v7 = vpop.f32.mrf.mxu2 }
 0x303   :  { %v357_v11 = vmul.f32 0.35355338, %v345_v7  ;;  %v370_v23 = vpop.xlane.xlu1 %369 }
 0x304   :  { %v393_v24 = vsub.f32 %v359_v54, %v370_v23 }
 0x305   :  { %v365_v15 = vadd.f32 %v357_v11, %v157_v52 }
 0x306   :  { %v401_v26 = vmul.f32 1.442695, %v393_v24 }
 0x307   :  { %v387_v19 = vsel %vm367_vm7, %v365_v15, -inf }
 0x308   :  { %v310_v8 = vpop.f32.mrf.mxu1  ;;  %2472 = vpow2.f32 %v401_v26 }
 0x309   :  { %v355_v9 = vmul.f32 0.35355338, %v310_v8 }
 0x30a   :  { %v348_v16 = vpop.f32.mrf.mxu2 }
 0x30b   :  { %v363_v10 = vadd.f32 %v355_v9, %v157_v52  ;;  %v358_v18 = vmul.f32 0.35355338, %v348_v16  ;;  %v374_v27 = vpop.xlane.xlu0 %373 }
 0x30c   :  { %v394_v28 = vsub.f32 %v360_v61, %v374_v27 }
 0x30d   :  { %v381_v12 = vsel %vm367_vm7, %v363_v10, -inf  ;;  %v366_v21 = vadd.f32 %v358_v18, %v158_v59 }
 0x30e   :  { %382 = vmax.xlane.f32.xlu2 %v381_v12  ;;  %v403_v30 = vmul.f32 1.442695, %v394_v28  ;;  %v2473_v31 = vpop.eup %2472 }
 0x30f   :  { %v390_v22 = vsel %vm371_vm8, %v366_v21, -inf  ;;  %v417_v32 = vsel %vm367_vm7, %v2473_v31, 0.0 }
 0x310   :  { %v313_v13 = vpop.f32.mrf.mxu1  ;;  %2474 = vpow2.f32 %v403_v30 }
 0x311   :  { %v356_v14 = vmul.f32 0.35355338, %v313_v13 }
 0x313   :  { %v2819_v17 = vadd.f32 %v356_v14, %v158_v59  ;;  %v2440_v59 = vunpack.i.h.bf16 %v2806_v55 }
 0x315   :  { %v384_v20 = vsel %vm371_vm8, %v2819_v17, -inf }
 0x316   :  { %388 = vmax.xlane.f32.xlu2 %v387_v19  ;;  %385 = vmax.xlane.f32.xlu1 %v384_v20  ;;  %v2475_v33 = vpop.eup %2474 }
 0x317   :  { %v420_v34 = vsel %vm371_vm8, %v2475_v33, 0.0 }
 0x31e   :  { %391 = vmax.xlane.f32.xlu1 %v390_v22 }
 0x32e   :  { %568 = vrot.lane.b32.xlu2 %v2769_v40, %s2588_s3 }
 0x357   :  { %418 = vadd.xlane.f32.xlu2 %v417_v32 }
 0x35f   :  { %421 = vadd.xlane.f32.xlu2 %v420_v34 }
 0x36a   :  { %v377_v37 = vpop.xlane.xlu2 %376 }
 0x36b   :  { %v395_v39 = vsub.f32 %v361_v1, %v377_v37  ;;  %v602_v37 = vld [vmem:[%s3764_s8] sm:$0xff] }
 0x36c   :  { %627 = vmatpush.msra.mxu3 %v602_v37  ;;  %v818_v37 = vld [vmem:[%s3766_s10 + $0x50] sm:$0xff] }
 0x36d   :  { %v405_v41 = vmul.f32 1.442695, %v395_v39 }
 0x36f   :  { %2476 = vpow2.f32 %v405_v41 }
 0x372   :  { %v380_v47 = vpop.xlane.xlu0 %379 }
 0x373   :  { %v396_v52 = vsub.f32 %v362_v5, %v380_v47  ;;  %v2441_v5 = vpack.i.bf16 %v2779_v42, %v2766_v38 }
 0x375   :  { %v2829_v40 = vpop.eup %2476  ;;  %v407_v56 = vmul.f32 1.442695, %v396_v52 }
 0x376   :  { %v423_v43 = vsel %vm367_vm7, %v2829_v40, 0.0 }
 0x377   :  { %424 = vadd.xlane.f32.xlu1 %v423_v43  ;;  %v603_v43 = vld [vmem:[%s3764_s8 + $0x8] sm:$0xff] }
 0x381   :  { %v383_v44 = vpop.xlane.xlu2 %382 }
 0x382   :  { %v397_v45 = vsub.f32 %v363_v10, %v383_v44  ;;  %v604_v44 = vld [vmem:[%s3764_s8 + $0x10] sm:$0xff] }
 0x384   :  { %v409_v46 = vmul.f32 1.442695, %v397_v45 }
 0x386   :  { %2478 = vpow2.f32 %v409_v46 }
 0x389   :  { %v389_v48 = vpop.xlane.xlu2 %388  ;;  %v386_v49 = vpop.xlane.xlu1 %385 }
 0x38a   :  { %v399_v50 = vsub.f32 %v365_v15, %v389_v48  ;;  %v398_v55 = vsub.f32 %v2819_v17, %v386_v49 }
 0x38c   :  { %v2833_v51 = vpop.eup %2478  ;;  %v413_v53 = vmul.f32 1.442695, %v399_v50  ;;  %v411_v3 = vmul.f32 1.442695, %v398_v55 }
 0x38d   :  { %v429_v54 = vsel %vm367_vm7, %v2833_v51, 0.0 }
 0x38e   :  { %2480 = vpow2.f32 %v413_v53  ;;  %430 = vadd.xlane.f32.xlu2 %v429_v54 }
 0x38f   :  { %2482 = vpow2.f32 %v407_v56 }
 0x390   :  { %496 = vrot.lane.b32.xlu1 %v2760_v35, %s2588_s3 }
 0x391   :  { %v569_v57 = vpop.permute.xlu2 %568  ;;  %v392_v58 = vpop.xlane.xlu1 %391 }
 0x392   :  { %2263 = vmatpush.msk.msra.mxu2 %vm468_vm6, %v569_v57  ;;  %v400_v61 = vsub.f32 %v366_v21, %v392_v58 }
 0x394   :  { %v2481_v60 = vpop.eup %2480  ;;  %594 = vmatpush.msra.mxu2 %v2440_v59  ;;  %v415_v63 = vmul.f32 1.442695, %v400_v61  ;;  %v2458_v61 = vld [vmem:[%s3765_s9] ss:$0 sm:$0xff] }
 0x395   :  { %v435_v62 = vsel %vm367_vm7, %v2481_v60, 0.0  ;;  %v2483_v0 = vpop.eup %2482 }
 0x396   :  { %436 = vadd.xlane.f32.xlu0 %v435_v62  ;;  %2484 = vpow2.f32 %v415_v63  ;;  %v426_v1 = vsel %vm371_vm8, %v2483_v0, 0.0 }
 0x397   :  { %2486 = vpow2.f32 %v411_v3 }
 0x39c   :  { %v2485_v35 = vpop.eup %2484 }
 0x39d   :  { %v438_v2 = vsel %vm371_vm8, %v2485_v35, 0.0  ;;  %v2487_v4 = vpop.eup %2486 }
 0x39e   :  { %427 = vadd.xlane.f32.xlu0 %v426_v1  ;;  %v432_v6 = vsel %vm371_vm8, %v2487_v4, 0.0 }
 0x3a6   :  { %532 = vrot.lane.b32.xlu2 %v2764_v36, %s2588_s3  ;;  %439 = vadd.xlane.f32.xlu0 %v438_v2 }
 0x3ba   :  { %433 = vadd.xlane.f32.xlu1 %v432_v6  ;;  %2442 = vrot.lane.b32.xlu0 %v2441_v5, %s2588_s3 }
 0x3ca   :  { %v419_v7 = vpop.xlane.xlu2 %418 }
 0x3cb   :  { %2488 = vrcp.f32 %v419_v7 }
 0x3d1   :  { %v2489_v8 = vpop.eup %2488 }
 0x3d2   :  { %v422_v9 = vpop.xlane.xlu2 %421  ;;  %v449_v10 = vmul.f32 %v2489_v8, %v2473_v31 }
 0x3d3   :  { %2490 = vrcp.f32 %v422_v9 }
 0x3d4   :  { %2255 = vmatmul.msk.f32.vlgmr.msrb.gmra.mxu3 %vm367_vm7, %v449_v10 }
 0x3d9   :  { %v2491_v36 = vpop.eup %2490 }
 0x3da   :  { %v450_v11 = vmul.f32 %v2491_v36, %v2475_v33 }
 0x3dc   :  { %2256 = vmatmul.msk.f32.gmra.mxu3 %vm367_vm7, %v450_v11 }
 0x3ea   :  { %v425_v12 = vpop.xlane.xlu1 %424 }
 0x401   :  { %v431_v13 = vpop.xlane.xlu2 %430 }
 0x402   :  { %v497_v38 = vpop.permute.xlu1 %496 }
 0x403   :  { %2257 = vmatpush.msk.msra.mxu0 %vm468_vm6, %v497_v38  ;;  %v2589_v38 = vmov 32.0  }
 0x409   :  { %v533_v42 = vpop.permute.xlu2 %532  ;;  %v437_v14 = vpop.xlane.xlu0 %436 }
 0x40a   :  { %2492 = vrcp.f32 %v437_v14  ;;  %2260 = vmatpush.msk.msra.mxu1 %vm468_vm6, %v533_v42 }
 0x410   :  { %v2493_v15 = vpop.eup %2492 }
 0x411   :  { %v455_v16 = vmul.f32 %v2493_v15, %v2481_v60  ;;  %v428_v17 = vpop.xlane.xlu0 %427 }
 0x413   :  { %2264 = vmatmul.msk.f32.vlgmr.msra.gmra.mxu2 %vm367_vm7, %v455_v16 }
 0x419   :  { %v440_v18 = vpop.xlane.xlu0 %439 }
 0x41a   :  { %2494 = vrcp.f32 %v440_v18 }
 0x41b   :  { %2496 = vrcp.f32 %v425_v12 }
 0x41c   :  { %2498 = vrcp.f32 %v431_v13 }
 0x41d   :  { %2500 = vrcp.f32 %v428_v17 }
 0x420   :  { %v2495_v19 = vpop.eup %2494 }
 0x421   :  { %v456_v20 = vmul.f32 %v2495_v19, %v2485_v35  ;;  %v2497_v21 = vpop.eup %2496 }
 0x422   :  { %v2499_v22 = vpop.eup %2498  ;;  %v451_v28 = vmul.f32 %v2497_v21, %v2829_v40  ;;  %v605_v40 = vld [vmem:[%s3764_s8 + $0x18] sm:$0xff] }
 0x423   :  { %2265 = vmatmul.msk.f32.gmra.mxu2 %vm367_vm7, %v456_v20  ;;  %v453_v30 = vmul.f32 %v2499_v22, %v2833_v51  ;;  %v2501_v31 = vpop.eup %2500 }
 0x424   :  { %v452_v33 = vmul.f32 %v2501_v31, %v2483_v0  ;;  %714 = vmatpush.msrb.mxu2 %v605_v40  ;;  %v822_v31 = vld [vmem:[%s3766_s10 + $0x70] sm:$0xff]  ;;  %v813_v40 = vld [vmem:[%s3766_s10 + $0x28] sm:$0xff] }
 0x42c   :  { %v2443_v23 = vpop.permute.xlu0 %2442 }
 0x42d   :  { %v434_v24 = vpop.xlane.xlu1 %433  ;;  %v2445_v26 = vunpack.i.h.bf16 %v2443_v23  ;;  %v2444_v27 = vunpack.i.l.bf16 %v2443_v23 }
 0x42e   :  { %2502 = vrcp.f32 %v434_v24 }
 0x42f   :  { %522 = vmatpush.msra.mxu0 %v2444_v27  ;;  %558 = vmatpush.msra.mxu1 %v2445_v26  ;;  %2504 = vrcp.f32 %v2589_v38 }
 0x430   :  { %2258 = vmatmul.msk.f32.vlgmr.msra.gmra.mxu0 %vm367_vm7, %v451_v28  ;;  %2261 = vmatmul.msk.f32.vlgmr.msra.gmra.mxu1 %vm367_vm7, %v453_v30  ;;  %v820_v28 = vld [vmem:[%s3766_s10 + $0x60] sm:$0xff]  ;;  %v821_v30 = vld [vmem:[%s3766_s10 + $0x68] sm:$0xff] }
 0x431   :  { %656 = vmatpush.msrb.mxu0 %v603_v43  ;;  %685 = vmatpush.msrb.mxu1 %v604_v44  ;;  %v814_v43 = vld [vmem:[%s3766_s10 + $0x30] sm:$0xff]  ;;  %v815_v44 = vld [vmem:[%s3766_s10 + $0x38] sm:$0xff] }
 0x432   :  { %852 = vmatpush.msrb.mxu3 %v820_v28  ;;  %v963_v28 = vld [vmem:[%s3768_s12 + $0xb8] sm:$0xff] }
 0x433   :  { %875 = vmatpush.msra.mxu0 %v821_v30  ;;  %898 = vmatpush.msra.mxu1 %v822_v31  ;;  %v979_v30 = vld [vmem:[%s3768_s12 + $0x138] sm:$0xff]  ;;  %v948_v31 = vld [vmem:[%s3768_s12 + $0x40] sm:$0xff] }
 0x434   :  { %v2503_v32 = vpop.eup %2502 }
 0x435   :  { %v454_v34 = vmul.f32 %v2503_v32, %v2487_v4  ;;  %v2505_v42 = vpop.eup %2504  ;;  %v823_v32 = vld [vmem:[%s3766_s10 + $0x78] sm:$0xff]  ;;  %899 = vmatpush.msra.mxu1 %v818_v37  ;;  %v962_v37 = vld [vmem:[%s3768_s12 + $0xb0] sm:$0xff] }
 0x436   :  { %v754_v14 = vmul.f32 32.0, %v2505_v42  ;;  %vm758_vm10 = vweird.f32 %v2505_v42  ;;  %921 = vmatpush.msra.mxu2 %v823_v32  ;;  %v996_v32 = vld [vmem:[%s3768_s12 + $0x1c0] sm:$0xff] }
 0x437   :  { %900 = vmatpush.msra.mxu1 %v814_v43  ;;  %v947_v43 = vld [vmem:[%s3768_s12 + $0x38] sm:$0xff] }
 0x438   :  { %2259 = vmatmul.msk.f32.gmra.mxu0 %vm367_vm7, %v452_v33  ;;  %2262 = vmatmul.msk.f32.gmra.mxu1 %vm367_vm7, %v454_v34  ;;  %v816_v33 = vld [vmem:[%s3766_s10 + $0x40] sm:$0xff]  ;;  %v817_v34 = vld [vmem:[%s3766_s10 + $0x48] sm:$0xff] }
 0x439   :  { %853 = vmatpush.msrb.mxu3 %v816_v33  ;;  %876 = vmatpush.msra.mxu0 %v817_v34 }
 0x43b   :  { %877 = vmatpush.msra.mxu0 %v813_v40  ;;  %v2460_v40 = vld [vmem:[%s3771_s15] ss:$0 sm:$0xff] }
 0x457   :  { %v488_v39 = vpop.f32.mrf.mxu3 }
 0x458   :  { %2266 = vmatmul.msk.f32.vlgmr.msra.gmra.mxu3 %vm214_vm5, %v488_v39  ;;  %v819_v39 = vld [vmem:[%s3766_s10 + $0x58] sm:$0xff] }
 0x459   :  { %922 = vmatpush.msra.mxu2 %v819_v39  ;;  %v978_v39 = vld [vmem:[%s3768_s12 + $0x130] sm:$0xff] }
 0x45b   :  { %923 = vmatpush.msra.mxu2 %v815_v44  ;;  %v995_v44 = vld [vmem:[%s3768_s12 + $0x1b8] sm:$0xff] }
 0x45f   :  { %v491_v41 = vpop.f32.mrf.mxu3 }
 0x460   :  { %2267 = vmatmul.msk.f32.gmra.mxu3 %vm214_vm5, %v491_v41  ;;  %v812_v41 = vld [vmem:[%s3766_s10 + $0x20] sm:$0xff] }
 0x461   :  { %854 = vmatpush.msrb.mxu3 %v812_v41 }
 0x496   :  { %v596_v45 = vpop.f32.mrf.mxu2 }
 0x497   :  { %2272 = vmatmul.msk.f32.vlgmr.msrb.gmra.mxu2 %vm214_vm5, %v596_v45  ;;  %v808_v45 = vld [vmem:[%s3766_s10] sm:$0xff] }
 0x498   :  { %855 = vmatpush.msrb.mxu3 %v808_v45 }
 0x4a6   :  { %v599_v46 = vpop.f32.mrf.mxu2 }
 0x4a7   :  { %2273 = vmatmul.msk.f32.gmra.mxu2 %vm214_vm5, %v599_v46  ;;  %v809_v46 = vld [vmem:[%s3766_s10 + $0x8] sm:$0xff] }
 0x4a8   :  { %878 = vmatpush.msra.mxu0 %v809_v46  ;;  %v977_v46 = vld [vmem:[%s3768_s12 + $0x128] sm:$0xff] }
 0x4ad   :  { %v524_v47 = vpop.f32.mrf.mxu0  ;;  %v560_v48 = vpop.f32.mrf.mxu1 }
 0x4ae   :  { %2268 = vmatmul.msk.f32.vlgmr.msrb.gmra.mxu0 %vm214_vm5, %v524_v47  ;;  %2270 = vmatmul.msk.f32.vlgmr.msrb.gmra.mxu1 %vm214_vm5, %v560_v48  ;;  %v810_v47 = vld [vmem:[%s3766_s10 + $0x10] sm:$0xff]  ;;  %v811_v48 = vld [vmem:[%s3766_s10 + $0x18] sm:$0xff] }
 0x4af   :  { %901 = vmatpush.msra.mxu1 %v810_v47  ;;  %924 = vmatpush.msra.mxu2 %v811_v48  ;;  %v946_v48 = vld [vmem:[%s3768_s12 + $0x30] sm:$0xff] }
 0x4b5   :  { %v527_v49 = vpop.f32.mrf.mxu0  ;;  %v563_v50 = vpop.f32.mrf.mxu1 }
 0x4b6   :  { %2269 = vmatmul.msk.f32.gmra.mxu0 %vm214_vm5, %v527_v49  ;;  %2271 = vmatmul.msk.f32.gmra.mxu1 %vm214_vm5, %v563_v50 }
 0x4db   :  { %v629_v51 = vpop.f32.mrf.mxu3 }
 0x4dc   :  { %v722_v54 = vsel %vm127_vm2, %v629_v51, 0.0 }
 0x4e3   :  { %v632_v63 = vpop.f32.mrf.mxu3 }
 0x4e4   :  { %v730_v55 = vsel %vm729_vm9, %v632_v63, 0.0  ;;  %v954_v63 = vld [vmem:[%s3768_s12 + $0x70] sm:$0xff] }
 0x51a   :  { %v716_v57 = vpop.f32.mrf.mxu2 }
 0x51b   :  { %v727_v62 = vsel %vm127_vm2, %v716_v57, 0.0 }
 0x52a   :  { %v719_v4 = vpop.f32.mrf.mxu2 }
 0x52b   :  { %v658_v52 = vpop.f32.mrf.mxu0  ;;  %v687_v53 = vpop.f32.mrf.mxu1  ;;  %v735_v10 = vsel %vm729_vm9, %v719_v4, 0.0  ;;  %v1001_v4 = vld [vmem:[%s3768_s12 + $0x1e8] sm:$0xff] }
 0x52c   :  { %v723_v56 = vsel %vm127_vm2, %v658_v52, 0.0  ;;  %v725_v59 = vsel %vm127_vm2, %v687_v53, 0.0  ;;  %v971_v52 = vld [vmem:[%s3768_s12 + $0xf8] sm:$0xff] }
 0x52d   :  { %v724_v58 = vadd.f32 %v723_v56, %v722_v54  ;;  %v987_v53 = vld [vmem:[%s3768_s12 + $0x178] sm:$0xff]  ;;  %v970_v54 = vld [vmem:[%s3768_s12 + $0xf0] sm:$0xff]  ;;  %1031 = vmatpush.msrb.mxu0 %v971_v52 }
 0x52e   :  { %1054 = vmatpush.msrb.mxu1 %v987_v53  ;;  %v986_v56 = vld [vmem:[%s3768_s12 + $0x170] sm:$0xff]  ;;  %v960_v53 = vld [vmem:[%s3768_s12 + $0xa0] sm:$0xff] }
 0x52f   :  { %v726_v60 = vadd.f32 %v725_v59, %v724_v58  ;;  %v969_v58 = vld [vmem:[%s3768_s12 + $0xe8] sm:$0xff]  ;;  %1032 = vmatpush.msrb.mxu0 %v970_v54  ;;  %v976_v54 = vld [vmem:[%s3768_s12 + $0x120] sm:$0xff] }
 0x530   :  { %v985_v59 = vld [vmem:[%s3768_s12 + $0x168] sm:$0xff]  ;;  %1055 = vmatpush.msrb.mxu1 %v986_v56 }
 0x531   :  { %v728_v0 = vadd.f32 %v727_v62, %v726_v60  ;;  %v955_v60 = vld [vmem:[%s3768_s12 + $0x78] sm:$0xff]  ;;  %1033 = vmatpush.msrb.mxu0 %v969_v58 }
 0x532   :  { %v1003_v62 = vld [vmem:[%s3768_s12 + $0x1f8] sm:$0xff]  ;;  %1008 = vmatpush.msra.mxu3 %v955_v60  ;;  %1056 = vmatpush.msrb.mxu1 %v985_v59 }
 0x533   :  { %v661_v1 = vpop.f32.mrf.mxu0  ;;  %v690_v35 = vpop.f32.mrf.mxu1  ;;  %v741_v2 = vadd.f32 %v2458_v61, %v728_v0  ;;  %v968_v0 = vld [vmem:[%s3768_s12 + $0xe0] sm:$0xff]  ;;  %1077 = vmatpush.msrb.mxu2 %v1003_v62  ;;  %v975_v58 = vld [vmem:[%s3768_s12 + $0x118] sm:$0xff]  ;;  %v958_v62 = vld [vmem:[%s3768_s12 + $0x90] sm:$0xff] }
 0x534   :  { %v731_v3 = vsel %vm729_vm9, %v661_v1, 0.0  ;;  %v733_v7 = vsel %vm729_vm9, %v690_v35, 0.0  ;;  %v984_v1 = vld [vmem:[%s3768_s12 + $0x160] sm:$0xff]  ;;  %v1002_v35 = vld [vmem:[%s3768_s12 + $0x1f0] sm:$0xff]  ;;  %1009 = vmatpush.msra.mxu3 %v954_v63  ;;  %1034 = vmatpush.msrb.mxu0 %v968_v0  ;;  %v993_v0 = vld [vmem:[%s3768_s12 + $0x1a8] sm:$0xff] }
 0x535   :  { %v732_v5 = vadd.f32 %v731_v3, %v730_v55  ;;  %v743_v6 = vadd.f32 %v741_v2, %v2741_v25  ;;  %v755_v25 = vsub.f32 1.0, %v754_v14  ;;  %v953_v3 = vld [vmem:[%s3768_s12 + $0x68] sm:$0xff]  ;;  %1078 = vmatpush.msrb.mxu2 %v1002_v35  ;;  %1057 = vmatpush.msrb.mxu1 %v984_v1  ;;  %v974_v63 = vld [vmem:[%s3768_s12 + $0x110] sm:$0xff]  ;;  %v944_v1 = vld [vmem:[%s3768_s12 + $0x20] sm:$0xff] }
 0x536   :  { %1010 = vmatpush.msra.mxu3 %v953_v3  ;;  %v981_v14 = vld [vmem:[%s3768_s12 + $0x148] sm:$0xff]  ;;  %v943_v3 = vld [vmem:[%s3768_s12 + $0x18] sm:$0xff] }
 0x537   :  { %v734_v8 = vadd.f32 %v733_v7, %v732_v5  ;;  %v747_v9 = vsel %vm127_vm2, %v743_v6, 0.0  ;;  %v756_v15 = vmul.f32 %v2505_v42, %v755_v25  ;;  %v983_v7 = vld [vmem:[%s3768_s12 + $0x158] sm:$0xff]  ;;  %1079 = vmatpush.msrb.mxu2 %v1001_v4  ;;  %v950_v25 = vld [vmem:[%s3768_s12 + $0x50] sm:$0xff]  ;;  %v957_v35 = vld [vmem:[%s3768_s12 + $0x88] sm:$0xff] }
 0x538   :  { %748 = vadd.xlane.f32.xlu0 %v747_v9  ;;  %v1000_v9 = vld [vmem:[%s3768_s12 + $0x1e0] sm:$0xff]  ;;  %1058 = vmatpush.msrb.mxu1 %v983_v7  ;;  %v942_v7 = vld [vmem:[%s3768_s12 + $0x10] sm:$0xff] }
 0x539   :  { %v736_v36 = vadd.f32 %v735_v10, %v734_v8  ;;  %v757_v16 = vadd.f32 %v2505_v42, %v756_v15  ;;  %v952_v8 = vld [vmem:[%s3768_s12 + $0x60] sm:$0xff]  ;;  %1080 = vmatpush.msrb.mxu2 %v1000_v9  ;;  %v998_v15 = vld [vmem:[%s3768_s12 + $0x1d0] sm:$0xff]  ;;  %v941_v9 = vld [vmem:[%s3768_s12 + $0x8] sm:$0xff] }
 0x53a   :  { %1011 = vmatpush.msra.mxu3 %v952_v8  ;;  %v956_v4 = vld [vmem:[%s3768_s12 + $0x80] sm:$0xff]  ;;  %v990_v8 = vld [vmem:[%s3768_s12 + $0x190] sm:$0xff] }
 0x53b   :  { %v742_v11 = vadd.f32 %v2458_v61, %v736_v36  ;;  %v2898_v17 = vsel %vm758_vm10, %v2505_v42, %v757_v16  ;;  %v966_v36 = vld [vmem:[%s3768_s12 + $0xd0] sm:$0xff]  ;;  %v965_v42 = vld [vmem:[%s3768_s12 + $0xc8] sm:$0xff] }
 0x53d   :  { %v744_v12 = vadd.f32 %v742_v11, %v2745_v29  ;;  %v982_v11 = vld [vmem:[%s3768_s12 + $0x150] sm:$0xff] }
 0x53e   :  { %1059 = vmatpush.msrb.mxu1 %v982_v11  ;;  %v988_v11 = vld [vmem:[%s3768_s12 + $0x180] sm:$0xff] }
 0x53f   :  { %v750_v13 = vsel %vm729_vm9, %v744_v12, 0.0 }
 0x540   :  { %751 = vadd.xlane.f32.xlu2 %v750_v13  ;;  %v999_v13 = vld [vmem:[%s3768_s12 + $0x1d8] sm:$0xff]  ;;  %1060 = vmatpush.msrb.mxu1 %v981_v14 }
 0x541   :  { %1081 = vmatpush.msrb.mxu2 %v999_v13 }
 0x543   :  { %1082 = vmatpush.msrb.mxu2 %v998_v15 }
 0x5ab   :  { %v749_v18 = vpop.xlane.xlu0 %748 }
 0x5ac   :  { %v760_v19 = vmul.f32 %v2898_v17, %v749_v18  ;;  %v964_v18 = vld [vmem:[%s3768_s12 + $0xc0] sm:$0xff] }
 0x5ae   :  { %v2901_v20 = vsub.f32 %v743_v6, %v760_v19  ;;  %v967_v6 = vld [vmem:[%s3768_s12 + $0xd8] sm:$0xff]  ;;  %v980_v19 = vld [vmem:[%s3768_s12 + $0x140] sm:$0xff] }
 0x5af   :  { %1035 = vmatpush.msrb.mxu0 %v967_v6  ;;  %1061 = vmatpush.msrb.mxu1 %v980_v19  ;;  %v991_v6 = vld [vmem:[%s3768_s12 + $0x198] sm:$0xff] }
 0x5b0   :  { %v764_v29 = vmul.f32 %v2901_v20, %v2901_v20 }
 0x5b1   :  { %1036 = vmatpush.msrb.mxu0 %v966_v36  ;;  %1062 = vmatpush.msrb.mxu1 %v979_v30  ;;  %v940_v36 = vld [vmem:[%s3768_s12] sm:$0xff] }
 0x5b2   :  { %v766_v21 = vsel %vm127_vm2, %v764_v29, 0.0 }
 0x5b3   :  { %767 = vadd.xlane.f32.xlu1 %v766_v21  ;;  %v752_v22 = vpop.xlane.xlu2 %751  ;;  %1037 = vmatpush.msrb.mxu0 %v965_v42  ;;  %v949_v21 = vld [vmem:[%s3768_s12 + $0x48] sm:$0xff] }
 0x5b4   :  { %v761_v23 = vmul.f32 %v2898_v17, %v752_v22  ;;  %v997_v22 = vld [vmem:[%s3768_s12 + $0x1c8] sm:$0xff]  ;;  %1063 = vmatpush.msrb.mxu1 %v978_v39 }
 0x5b5   :  { %1038 = vmatpush.msrb.mxu0 %v964_v18  ;;  %1083 = vmatpush.msrb.mxu2 %v997_v22 }
 0x5b6   :  { %v2907_v24 = vsub.f32 %v744_v12, %v761_v23  ;;  %v951_v12 = vld [vmem:[%s3768_s12 + $0x58] sm:$0xff]  ;;  %v2459_v23 = vld [vmem:[%s3770_s14] ss:$0 sm:$0xff]  ;;  %1064 = vmatpush.msrb.mxu1 %v977_v46 }
 0x5b7   :  { %1012 = vmatpush.msra.mxu3 %v951_v12  ;;  %1039 = vmatpush.msrb.mxu0 %v963_v28  ;;  %v824_v12 = vld [vmem:[%s3767_s11] sm:$0xf] }
 0x5b8   :  { %v765_v26 = vmul.f32 %v2907_v24, %v2907_v24  ;;  %1084 = vmatpush.msrb.mxu2 %v996_v32  ;;  %1065 = vmatpush.msrb.mxu1 %v976_v54  ;;  %v827_v13 = vperm.slane %v824_v12, 1  ;;  %v826_v18 = vperm.slane %v824_v12, 0 }
 0x5b9   :  { %1013 = vmatpush.msra.mxu3 %v950_v25  ;;  %1040 = vmatpush.msrb.mxu0 %v962_v37 }
 0x5ba   :  { %v769_v27 = vsel %vm729_vm9, %v765_v26, 0.0  ;;  %1085 = vmatpush.msrb.mxu2 %v995_v44  ;;  %1066 = vmatpush.msrb.mxu1 %v975_v58 }
 0x5bb   :  { %770 = vadd.xlane.f32.xlu0 %v769_v27  ;;  %1014 = vmatpush.msra.mxu3 %v949_v21 }
 0x5bc   :  { %1067 = vmatpush.msrb.mxu1 %v974_v63 }
 0x5bd   :  { %1015 = vmatpush.msra.mxu3 %v948_v31 }
 0x5bf   :  { %1016 = vmatpush.msra.mxu3 %v947_v43 }
 0x5c1   :  { %1017 = vmatpush.msra.mxu3 %v946_v48 }
 0x626   :  { %v768_v49 = vpop.xlane.xlu1 %767 }
 0x627   :  { %v772_v50 = vmul.f32 %v768_v49, %v2898_v17  ;;  %v994_v49 = vld [vmem:[%s3768_s12 + $0x1b0] sm:$0xff] }
 0x628   :  { %1086 = vmatpush.msrb.mxu2 %v994_v49 }
 0x629   :  { %v2961_v51 = vadd.f32 1e-05, %v772_v50 }
 0x62a   :  { %1087 = vmatpush.msrb.mxu2 %v993_v0 }
 0x62b   :  { %2506 = vrsqrt.f32 %v2961_v51  ;;  %vm782_vm12 = vweird.f32 %v2961_v51 }
 0x62e   :  { %v771_v57 = vpop.xlane.xlu0 %770 }
 0x62f   :  { %v773_v61 = vmul.f32 %v771_v57, %v2898_v17  ;;  %v959_v57 = vld [vmem:[%s3768_s12 + $0x98] sm:$0xff] }
 0x631   :  { %v3001_v2 = vpop.eup %2506  ;;  %v3003_v55 = vadd.f32 1e-05, %v773_v61 }
 0x632   :  { %v777_v5 = vmul.f32 %v3001_v2, %v2961_v51  ;;  %vm783_vm11 = vweird.f32 %v3001_v2 }
 0x633   :  { %2508 = vrsqrt.f32 %v3003_v55  ;;  %vm784_vm13 = vmor %vm782_vm12, %vm783_vm11  ;;  %vm792_vm15 = vweird.f32 %v3003_v55 }
 0x634   :  { %v778_v10 = vmul.f32 %v3001_v2, %v777_v5  ;;  %v972_v5 = vld [vmem:[%s3768_s12 + $0x100] sm:$0xff] }
 0x636   :  { %v779_v38 = vmul.f32 0.5, %v778_v10  ;;  %v989_v10 = vld [vmem:[%s3768_s12 + $0x188] sm:$0xff] }
 0x638   :  { %v780_v16 = vsub.f32 1.5, %v779_v38  ;;  %v828_v38 = vperm.slane %v824_v12, 2 }
 0x639   :  { %v2509_v29 = vpop.eup %2508 }
 0x63a   :  { %v781_v26 = vmul.f32 %v3001_v2, %v780_v16  ;;  %v787_v27 = vmul.f32 %v2509_v29, %v3003_v55  ;;  %vm793_vm14 = vweird.f32 %v2509_v29  ;;  %v992_v55 = vld [vmem:[%s3768_s12 + $0x1a0] sm:$0xff] }
 0x63b   :  { %vm794_vm0 = vmor %vm792_vm15, %vm793_vm14  ;;  %1088 = vmatpush.msrb.mxu2 %v992_v55 }
 0x63c   :  { %v785_v33 = vsel %vm784_vm13, %v3001_v2, %v781_v26  ;;  %v788_v34 = vmul.f32 %v2509_v29, %v787_v27  ;;  %v973_v2 = vld [vmem:[%s3768_s12 + $0x108] sm:$0xff] }
 0x63d   :  { %v796_v41 = vmul.f32 %v785_v33, %v2901_v20  ;;  %v961_v20 = vld [vmem:[%s3768_s12 + $0xa8] sm:$0xff]  ;;  %1068 = vmatpush.msrb.mxu1 %v973_v2  ;;  %1089 = vmatpush.msrb.mxu2 %v991_v6 }
 0x63e   :  { %v789_v45 = vmul.f32 0.5, %v788_v34  ;;  %1041 = vmatpush.msrb.mxu0 %v961_v20  ;;  %v2461_v20 = vld [vmem:[%s3793_s30] ss:$0 sm:$0xff] }
 0x63f   :  { %v801_v47 = vmul.f32 %v2459_v23, %v796_v41  ;;  %1069 = vmatpush.msrb.mxu1 %v972_v5  ;;  %1090 = vmatpush.msrb.mxu2 %v990_v8 }
 0x640   :  { %v790_v50 = vsub.f32 1.5, %v789_v45  ;;  %1042 = vmatpush.msrb.mxu0 %v960_v53 }
 0x641   :  { %v3113_v51 = vadd.f32 %v2460_v40, %v801_v47  ;;  %1091 = vmatpush.msrb.mxu2 %v989_v10 }
 0x642   :  { %v791_v52 = vmul.f32 %v2509_v29, %v790_v50  ;;  %1043 = vmatpush.msrb.mxu0 %v959_v57 }
 0x643   :  { %2274 = vmatmul.msk.f32.vlgmr.msrb.gmra.mxu3 %vm127_vm2, %v3113_v51  ;;  %2276 = vmatmul.msk.f32.vlgmr.msra.gmra.mxu0 %vm127_vm2, %v3113_v51 }
 0x644   :  { %v795_v56 = vsel %vm794_vm0, %v2509_v29, %v791_v52  ;;  %2278 = vmatmul.msk.f32.vlgmr.msra.gmra.mxu1 %vm127_vm2, %v3113_v51  ;;  %2280 = vmatmul.msk.f32.vlgmr.msra.gmra.mxu2 %vm127_vm2, %v3113_v51  ;;  %v829_v29 = vperm.slane %v824_v12, 3  ;;  %v2282_v12 = vld [vmem:[%s3762_s6 + $0x20] sm:$0xff] }
 0x645   :  { %v797_v59 = vmul.f32 %v795_v56, %v2907_v24  ;;  %v945_v24 = vld [vmem:[%s3768_s12 + $0x28] sm:$0xff]  ;;  %1044 = vmatpush.msrb.mxu0 %v958_v62  ;;  %1092 = vmatpush.msrb.mxu2 %v988_v11 }
 0x646   :  { %1018 = vmatpush.msra.mxu3 %v945_v24  ;;  %v2283_v11 = vld [vmem:[%s3762_s6 + $0x28] sm:$0xff] }
 0x647   :  { %v802_v60 = vmul.f32 %v2459_v23, %v797_v59  ;;  %1045 = vmatpush.msrb.mxu0 %v957_v35 }
 0x648   :  { %1019 = vmatpush.msra.mxu3 %v944_v1 }
 0x649   :  { %v3137_v61 = vadd.f32 %v2460_v40, %v802_v60  ;;  %1046 = vmatpush.msrb.mxu0 %v956_v4 }
 0x64a   :  { %1020 = vmatpush.msra.mxu3 %v943_v3 }
 0x64b   :  { %2275 = vmatmul.msk.f32.gmra.mxu3 %vm127_vm2, %v3137_v61  ;;  %2277 = vmatmul.msk.f32.gmra.mxu0 %vm127_vm2, %v3137_v61 }
 0x64c   :  { %2279 = vmatmul.msk.f32.gmra.mxu1 %vm127_vm2, %v3137_v61  ;;  %2281 = vmatmul.msk.f32.gmra.mxu2 %vm127_vm2, %v3137_v61 }
 0x64d   :  { %1021 = vmatpush.msra.mxu3 %v942_v7 }
 0x64f   :  { %1022 = vmatpush.msra.mxu3 %v941_v9 }
 0x651   :  { %1023 = vmatpush.msra.mxu3 %v940_v36  ;;  %v2284_v36 = vld [vmem:[%s3762_s6 + $0x30] sm:$0xff] }
 0x6c0   :  { %v880_v42 = vpop.f32.mrf.mxu0 }
 0x6c1   :  { %v881_v14 = vadd.f32 %v880_v42, %v827_v13  ;;  %v903_v25 = vpop.f32.mrf.mxu1 }
 0x6c2   :  { %v904_v15 = vadd.f32 %v903_v25, %v828_v38 }
 0x6c3   :  { %v933_v16 = vmax.f32 %v881_v14, 0.0 }
 0x6c4   :  { %v934_v19 = vmax.f32 %v904_v15, 0.0 }
 0x6c5   :  { %1047 = vmatmul.f32.vlgmr.msrb.gmra.mxu0 %v933_v16 }
 0x6c6   :  { %1070 = vmatmul.f32.vlgmr.msrb.gmra.mxu1 %v934_v19  ;;  %v857_v21 = vpop.f32.mrf.mxu3 }
 0x6c7   :  { %v858_v22 = vadd.f32 %v857_v21, %v826_v18  ;;  %v926_v23 = vpop.f32.mrf.mxu2 }
 0x6c8   :  { %v927_v26 = vadd.f32 %v926_v23, %v829_v29  ;;  %v883_v27 = vpop.f32.mrf.mxu0 }
 0x6c9   :  { %v932_v28 = vmax.f32 %v858_v22, 0.0  ;;  %v884_v30 = vadd.f32 %v883_v27, %v827_v13  ;;  %v906_v31 = vpop.f32.mrf.mxu1  ;;  %v2462_v27 = vld [vmem:[%s3772_s16] ss:$0 sm:$0xff] }
 0x6ca   :  { %v935_v32 = vmax.f32 %v927_v26, 0.0  ;;  %v907_v33 = vadd.f32 %v906_v31, %v828_v38 }
 0x6cb   :  { %v937_v34 = vmax.f32 %v884_v30, 0.0  ;;  %1024 = vmatmul.f32.vlgmr.msra.gmra.mxu3 %v932_v28 }
 0x6cc   :  { %v938_v37 = vmax.f32 %v907_v33, 0.0  ;;  %1093 = vmatmul.f32.vlgmr.msrb.gmra.mxu2 %v935_v32  ;;  %v2463_v32 = vld [vmem:[%s3773_s17] ss:$0 sm:$0xff] }
 0x6cd   :  { %1050 = vmatmul.f32.gmra.mxu0 %v937_v34 }
 0x6ce   :  { %1073 = vmatmul.f32.gmra.mxu1 %v938_v37  ;;  %v860_v39 = vpop.f32.mrf.mxu3 }
 0x6cf   :  { %v861_v41 = vadd.f32 %v860_v39, %v826_v18  ;;  %v929_v40 = vpop.f32.mrf.mxu2 }
 0x6d0   :  { %v930_v43 = vadd.f32 %v929_v40, %v829_v29 }
 0x6d1   :  { %v936_v44 = vmax.f32 %v861_v41, 0.0 }
 0x6d2   :  { %v939_v45 = vmax.f32 %v930_v43, 0.0 }
 0x6d3   :  { %1027 = vmatmul.f32.gmra.mxu3 %v936_v44 }
 0x6d4   :  { %1096 = vmatmul.f32.gmra.mxu2 %v939_v45 }
 0x742   :  { %v1048_v46 = vpop.f32.mrf.mxu0 }
 0x743   :  { %v1071_v49 = vpop.f32.mrf.mxu1 }
 0x74a   :  { %v1051_v59 = vpop.f32.mrf.mxu0 }
 0x74b   :  { %v1074_v62 = vpop.f32.mrf.mxu1 }
 0x74e   :  { %v1025_v47 = vpop.f32.mrf.mxu3 }
 0x74f   :  { %v1026_v48 = vadd.f32 %v2461_v20, %v1025_v47  ;;  %v1094_v52 = vpop.f32.mrf.mxu2 }
 0x751   :  { %v1049_v50 = vadd.f32 %v1048_v46, %v1026_v48 }
 0x753   :  { %v1072_v53 = vadd.f32 %v1071_v49, %v1049_v50 }
 0x755   :  { %v1095_v54 = vadd.f32 %v1094_v52, %v1072_v53 }
 0x756   :  { %v1028_v56 = vpop.f32.mrf.mxu3 }
 0x757   :  { %v1029_v57 = vadd.f32 %v2461_v20, %v1028_v56  ;;  %v1100_v58 = vadd.f32 %v1095_v54, %v3113_v51  ;;  %v1097_v0 = vpop.f32.mrf.mxu2  ;;  %v2464_v20 = vld [vmem:[%s3763_s7 + $0x1] ss:$0 sm:$0xff] }
 0x759   :  { %v1052_v60 = vadd.f32 %v1051_v59, %v1029_v57  ;;  %v1104_v24 = vsel %vm127_vm2, %v1100_v58, 0.0 }
 0x75a   :  { %1105 = vadd.xlane.f32.xlu1 %v1104_v24 }
 0x75b   :  { %v1075_v63 = vadd.f32 %v1074_v62, %v1052_v60 }
 0x75d   :  { %v1098_v1 = vadd.f32 %v1097_v0, %v1075_v63 }
 0x75f   :  { %v1101_v35 = vadd.f32 %v1098_v1, %v3137_v61  ;;  %v2285_v61 = vld [vmem:[%s3762_s6 + $0x38] sm:$0xff] }
 0x760   :  { %1186 = vmatpush.msrb.mxu3 %v2285_v61 }
 0x761   :  { %v1107_v2 = vsel %vm729_vm9, %v1101_v35, 0.0 }
 0x762   :  { %1108 = vadd.xlane.f32.xlu2 %v1107_v2  ;;  %1187 = vmatpush.msrb.mxu3 %v2284_v36 }
 0x764   :  { %1188 = vmatpush.msrb.mxu3 %v2283_v11 }
 0x766   :  { %1189 = vmatpush.msrb.mxu3 %v2282_v12 }
 0x7cd   :  { %v1106_v55 = vpop.xlane.xlu1 %1105 }
 0x7ce   :  { %v1110_v3 = vmul.f32 %v1106_v55, %v2898_v17 }
 0x7d0   :  { %v1112_v4 = vsub.f32 %v1100_v58, %v1110_v3 }
 0x7d2   :  { %v1114_v5 = vmul.f32 %v1112_v4, %v1112_v4 }
 0x7d4   :  { %v1116_v51 = vsel %vm127_vm2, %v1114_v5, 0.0 }
 0x7d5   :  { %1117 = vadd.xlane.f32.xlu0 %v1116_v51  ;;  %v1109_v6 = vpop.xlane.xlu2 %1108 }
 0x7d6   :  { %v1111_v7 = vmul.f32 %v1109_v6, %v2898_v17  ;;  %v2554_v6 = vld [vmem:[%s3792_s13] sm:$0xff] }
 0x7d8   :  { %v1113_v8 = vsub.f32 %v1101_v35, %v1111_v7 }
 0x7da   :  { %v1115_v9 = vmul.f32 %v1113_v8, %v1113_v8 }
 0x7dc   :  { %v1119_v10 = vsel %vm729_vm9, %v1115_v9, 0.0  ;;  %v2555_v9 = vld [vmem:[%s3792_s13 + $0x8] sm:$0xf] }
 0x7dd   :  { %1120 = vadd.xlane.f32.xlu1 %v1119_v10 }
 0x848   :  { %v1118_v13 = vpop.xlane.xlu0 %1117 }
 0x849   :  { %v1122_v38 = vmul.f32 %v1118_v13, %v2898_v17 }
 0x84b   :  { %v1124_v42 = vadd.f32 1e-05, %v1122_v38 }
 0x84d   :  { %2510 = vrsqrt.f32 %v1124_v42  ;;  %vm1132_vm3 = vweird.f32 %v1124_v42 }
 0x850   :  { %v1121_v14 = vpop.xlane.xlu1 %1120 }
 0x851   :  { %v1123_v25 = vmul.f32 %v1121_v14, %v2898_v17 }
 0x853   :  { %v2511_v15 = vpop.eup %2510  ;;  %v1125_v16 = vadd.f32 1e-05, %v1123_v25 }
 0x854   :  { %v1127_v18 = vmul.f32 %v2511_v15, %v1124_v42  ;;  %vm1133_vm1 = vweird.f32 %v2511_v15 }
 0x855   :  { %2512 = vrsqrt.f32 %v1125_v16  ;;  %vm1134_vm4 = vmor %vm1132_vm3, %vm1133_vm1  ;;  %vm1142_vm11 = vweird.f32 %v1125_v16 }
 0x856   :  { %v1128_v19 = vmul.f32 %v2511_v15, %v1127_v18 }
 0x858   :  { %v1129_v29 = vmul.f32 0.5, %v1128_v19 }
 0x85a   :  { %v1130_v21 = vsub.f32 1.5, %v1129_v29 }
 0x85b   :  { %v2513_v22 = vpop.eup %2512 }
 0x85c   :  { %v1131_v23 = vmul.f32 %v2511_v15, %v1130_v21  ;;  %v1137_v26 = vmul.f32 %v2513_v22, %v1125_v16  ;;  %vm1143_vm10 = vweird.f32 %v2513_v22 }
 0x85d   :  { %vm1144_vm12 = vmor %vm1142_vm11, %vm1143_vm10  ;;  %vm2208_vm10 = vcmask 523264   ;;  %vm2210_vm11 = vcmask 785408  }
 0x85e   :  { %v1135_v28 = vsel %vm1134_vm4, %v2511_v15, %v1131_v23  ;;  %v1138_v30 = vmul.f32 %v2513_v22, %v1137_v26 }
 0x85f   :  { %v1146_v31 = vmul.f32 %v1135_v28, %v1112_v4 }
 0x860   :  { %v1139_v33 = vmul.f32 0.5, %v1138_v30 }
 0x861   :  { %v1151_v34 = vmul.f32 %v2462_v27, %v1146_v31 }
 0x862   :  { %v1140_v37 = vsub.f32 1.5, %v1139_v33 }
 0x863   :  { %v3235_v39 = vadd.f32 %v2463_v32, %v1151_v34 }
 0x864   :  { %v1141_v41 = vmul.f32 %v2513_v22, %v1140_v37 }
 0x865   :  { %2287 = vmatmul.msk.f32.vlgmr.msrb.gmra.mxu3 %vm127_vm2, %v3235_v39 }
 0x866   :  { %v1145_v40 = vsel %vm1144_vm12, %v2513_v22, %v1141_v41 }
 0x867   :  { %v1147_v43 = vmul.f32 %v1145_v40, %v1113_v8 }
 0x869   :  { %v1152_v44 = vmul.f32 %v2462_v27, %v1147_v43 }
 0x86b   :  { %v3239_v45 = vadd.f32 %v2463_v32, %v1152_v44 }
 0x86d   :  { %2288 = vmatmul.msk.f32.gmra.mxu3 %vm127_vm2, %v3239_v45 }
 0x8e8   :  { %v1191_v46 = vpop.f32.mrf.mxu3 }
 0x8e9   :  { %v3246_v47 = vadd.f32 %v2464_v20, %v1191_v46 }
 0x8eb   :  { %1203 = vrot.lane.b32.xlu1 %v3246_v47, %s2587_s25 }
 0x8f0   :  { %v1194_v48 = vpop.f32.mrf.mxu3 }
 0x8f1   :  { %v3250_v49 = vadd.f32 %v2464_v20, %v1194_v48 }
 0x8f3   :  { %1199 = vrot.lane.b32.xlu1 %v3246_v47, %s2584_s5  ;;  %1209 = vrot.lane.b32.xlu0 %v3250_v49, %s2586_s2 }
 0x8f4   :  { %1205 = vrot.lane.b32.xlu2 %v3250_v49, %s2587_s25 }
 0x8fb   :  { %1207 = vrot.lane.b32.xlu0 %v3246_v47, %s2586_s2 }
 0x8fc   :  { %1201 = vrot.lane.b32.xlu2 %v3250_v49, %s2584_s5 }
 0x94e   :  { %v1206_v50 = vpop.permute.xlu2 %1205 }
 0x94f   :  { %1283 = vrot.lane.b32.xlu0 %v1206_v50, %s2585_s24 }
 0x956   :  { %v3267_v53 = vpop.permute.xlu2 %1201 }
 0x95d   :  { %v3263_v52 = vpop.permute.xlu1 %1203 }
 0x95e   :  { %1281 = vrot.lane.b32.xlu1 %v3263_v52, %s2585_s24 }
 0x965   :  { %v1210_v54 = vpop.permute.xlu0 %1209  ;;  %v3278_v57 = vpop.permute.xlu1 %1199 }
 0x966   :  { %1318 = vrot.lane.b32.xlu2 %v1210_v54, %s2585_s24  ;;  %1248 = vrot.lane.b32.xlu1 %v3267_v53, %s2585_s24 }
 0x96d   :  { %v3272_v56 = vpop.permute.xlu0 %1207 }
 0x96e   :  { %1213 = vrot.lane.b32.xlu2 %v3250_v49, %s2585_s24  ;;  %1316 = vrot.lane.b32.xlu0 %v3272_v56, %s2585_s24  ;;  %v2446_v34 = vpack.i.bf16 %v3272_v56, %v3263_v52 }
 0x976   :  { %1211 = vrot.lane.b32.xlu0 %v3246_v47, %s2585_s24  ;;  %1246 = vrot.lane.b32.xlu2 %v3278_v57, %s2585_s24 }
 0x97e   :  { %1529 = vrot.lane.b32.xlu0 %v1206_v50, %s2588_s3  ;;  %1565 = vrot.lane.b32.xlu2 %v1210_v54, %s2588_s3 }
 0x9c0   :  { %v1319_v58 = vpop.permute.xlu2 %1318 }
 0x9c1   :  { %v1284_v59 = vpop.permute.xlu0 %1283  ;;  %2301 = vmatpush.xpose.msk.msra.mxu3 %vm214_vm5, %v1319_v58 }
 0x9c2   :  { %2297 = vmatpush.xpose.msk.msra.mxu2 %vm214_vm5, %v1284_v59 }
 0x9c8   :  { %v1214_v60 = vpop.permute.xlu2 %1213 }
 0x9c9   :  { %2289 = vmatpush.xpose.msk.msra.mxu0 %vm214_vm5, %v1214_v60 }
 0x9d0   :  { %v1282_v24 = vpop.permute.xlu1 %1281  ;;  %v1247_v62 = vpop.permute.xlu2 %1246 }
 0x9d1   :  { %2298 = vmatpush.xpose.msk.msra.mxu2 %vm214_vm5, %v1282_v24 }
 0x9d4   :  { %2299 = vmatmul.msk.f32.vlgmr.msra.gmra.mxu2 %vm214_vm5, %v3263_v52 }
 0x9d8   :  { %v1249_v63 = vpop.permute.xlu1 %1248  ;;  %v1566_v1 = vpop.permute.xlu2 %1565 }
 0x9d9   :  { %2293 = vmatpush.xpose.msk.msra.mxu1 %vm214_vm5, %v1249_v63 }
 0x9dc   :  { %2300 = vmatmul.msk.f32.gmra.mxu2 %vm214_vm5, %v1206_v50 }
 0x9dd   :  { %2294 = vmatpush.xpose.msk.msra.mxu1 %vm214_vm5, %v1247_v62 }
 0x9e0   :  { %v1317_v0 = vpop.permute.xlu0 %1316  ;;  %2295 = vmatmul.msk.f32.vlgmr.msra.gmra.mxu1 %vm214_vm5, %v3278_v57 }
 0x9e1   :  { %2302 = vmatpush.xpose.msk.msra.mxu3 %vm214_vm5, %v1317_v0 }
 0x9e4   :  { %2303 = vmatmul.msk.f32.vlgmr.msra.gmra.mxu3 %vm214_vm5, %v3272_v56 }
 0x9e5   :  { %2314 = vmatpush.msk.msrb.mxu3 %vm468_vm6, %v1566_v1 }
 0x9e8   :  { %v1212_v35 = vpop.permute.xlu0 %1211  ;;  %2296 = vmatmul.msk.f32.gmra.mxu1 %vm214_vm5, %v3267_v53 }
 0x9e9   :  { %2290 = vmatpush.xpose.msk.msra.mxu0 %vm214_vm5, %v1212_v35 }
 0x9ec   :  { %2291 = vmatmul.msk.f32.vlgmr.msra.gmra.mxu0 %vm214_vm5, %v3246_v47  ;;  %2304 = vmatmul.msk.f32.gmra.mxu3 %vm214_vm5, %v1210_v54 }
 0x9f0   :  { %v1530_v2 = vpop.permute.xlu0 %1529 }
 0x9f1   :  { %2311 = vmatpush.msk.msrb.mxu2 %vm468_vm6, %v1530_v2 }
 0x9f4   :  { %2292 = vmatmul.msk.f32.gmra.mxu0 %vm214_vm5, %v3250_v49 }
 0xa57   :  { %v1310_v55 = vpop.f32.mrf.mxu2 }
 0xa58   :  { %v1355_v30 = vmul.f32 0.35355338, %v1310_v55 }
 0xa5a   :  { %v1363_v32 = vadd.f32 %v2554_v6, %v1355_v30 }
 0xa5c   :  { %v1379_v33 = vsel %vm367_vm7, %v1363_v32, -inf }
 0xa5d   :  { %v1275_v3 = vpop.f32.mrf.mxu1 }
 0xa5e   :  { %v1353_v4 = vmul.f32 0.35355338, %v1275_v3 }
 0xa5f   :  { %v1313_v5 = vpop.f32.mrf.mxu2 }
 0xa60   :  { %v1356_v51 = vmul.f32 0.35355338, %v1313_v5  ;;  %v1361_v7 = vadd.f32 %v2554_v6, %v1353_v4 }
 0xa62   :  { %v1373_v8 = vsel %vm367_vm7, %v1361_v7, -inf  ;;  %v3317_v10 = vadd.f32 %v2555_v9, %v1356_v51 }
 0xa63   :  { %1374 = vmax.xlane.f32.xlu0 %v1373_v8 }
 0xa64   :  { %v1382_v61 = vsel %vm371_vm8, %v3317_v10, -inf }
 0xa65   :  { %1383 = vmax.xlane.f32.xlu2 %v1382_v61  ;;  %v1278_v12 = vpop.f32.mrf.mxu1 }
 0xa66   :  { %v1354_v14 = vmul.f32 0.35355338, %v1278_v12 }
 0xa67   :  { %v1345_v36 = vpop.f32.mrf.mxu3 }
 0xa68   :  { %v1357_v11 = vmul.f32 0.35355338, %v1345_v36  ;;  %v1362_v29 = vadd.f32 %v2555_v9, %v1354_v14 }
 0xa69   :  { %v1240_v13 = vpop.f32.mrf.mxu0 }
 0xa6a   :  { %v1351_v38 = vmul.f32 0.35355338, %v1240_v13  ;;  %v1365_v42 = vadd.f32 %v2554_v6, %v1357_v11  ;;  %v1376_v27 = vsel %vm371_vm8, %v1362_v29, -inf }
 0xa6c   :  { %v1385_v25 = vsel %vm367_vm7, %v1365_v42, -inf  ;;  %v1359_v15 = vadd.f32 %v2554_v6, %v1351_v38 }
 0xa6d   :  { %1386 = vmax.xlane.f32.xlu0 %v1385_v25 }
 0xa6e   :  { %v1367_v16 = vsel %vm367_vm7, %v1359_v15, -inf }
 0xa6f   :  { %v1348_v18 = vpop.f32.mrf.mxu3  ;;  %1368 = vmax.xlane.f32.xlu1 %v1367_v16  ;;  %v2451_v16 = vpack.i.bf16 %v3278_v57, %v3246_v47 }
 0xa70   :  { %v1358_v19 = vmul.f32 0.35355338, %v1348_v18 }
 0xa71   :  { %v1243_v21 = vpop.f32.mrf.mxu0 }
 0xa72   :  { %v1352_v22 = vmul.f32 0.35355338, %v1243_v21  ;;  %v3323_v23 = vadd.f32 %v2555_v9, %v1358_v19 }
 0xa74   :  { %v1388_v26 = vsel %vm371_vm8, %v3323_v23, -inf  ;;  %v1360_v28 = vadd.f32 %v2555_v9, %v1352_v22 }
 0xa75   :  { %1389 = vmax.xlane.f32.xlu2 %v1388_v26  ;;  %1377 = vmax.xlane.f32.xlu0 %v1376_v27 }
 0xa76   :  { %v1370_v31 = vsel %vm371_vm8, %v1360_v28, -inf }
 0xa77   :  { %1371 = vmax.xlane.f32.xlu1 %v1370_v31 }
 0xa7f   :  { %1380 = vmax.xlane.f32.xlu1 %v1379_v33 }
 0xa89   :  { %1457 = vrot.lane.b32.xlu0 %v3250_v49, %s2588_s3 }
 0xa98   :  { %2447 = vrot.lane.b32.xlu1 %v2446_v34, %s2588_s3 }
 0xad6   :  { %v1375_v37 = vpop.xlane.xlu0 %1374 }
 0xad7   :  { %v1393_v41 = vsub.f32 %v1361_v7, %v1375_v37 }
 0xad8   :  { %v1384_v35 = vpop.xlane.xlu2 %1383 }
 0xad9   :  { %v1403_v40 = vmul.f32 1.442695, %v1393_v41  ;;  %v1396_v5 = vsub.f32 %v3317_v10, %v1384_v35 }
 0xadb   :  { %2514 = vpow2.f32 %v1403_v40  ;;  %v1409_v8 = vmul.f32 1.442695, %v1396_v5 }
 0xae0   :  { %v1387_v43 = vpop.xlane.xlu0 %1386 }
 0xae1   :  { %v3335_v44 = vpop.eup %2514  ;;  %v1397_v20 = vsub.f32 %v1365_v42, %v1387_v43 }
 0xae2   :  { %v1369_v46 = vpop.xlane.xlu1 %1368  ;;  %v1421_v48 = vsel %vm367_vm7, %v3335_v44, 0.0 }
 0xae3   :  { %v1411_v50 = vmul.f32 1.442695, %v1397_v20  ;;  %v1391_v54 = vsub.f32 %v1359_v15, %v1369_v46  ;;  %1422 = vadd.xlane.f32.xlu1 %v1421_v48 }
 0xae5   :  { %2516 = vpow2.f32 %v1411_v50  ;;  %v1399_v49 = vmul.f32 1.442695, %v1391_v54 }
 0xae7   :  { %2518 = vpow2.f32 %v1399_v49 }
 0xae8   :  { %v1378_v52 = vpop.xlane.xlu0 %1377  ;;  %v1390_v9 = vpop.xlane.xlu2 %1389 }
 0xae9   :  { %v1394_v56 = vsub.f32 %v1362_v29, %v1378_v52  ;;  %v1398_v11 = vsub.f32 %v3323_v23, %v1390_v9 }
 0xaea   :  { %v1372_v58 = vpop.xlane.xlu1 %1371 }
 0xaeb   :  { %v2517_v59 = vpop.eup %2516  ;;  %v1405_v60 = vmul.f32 1.442695, %v1394_v56  ;;  %v1392_v24 = vsub.f32 %v1360_v28, %v1372_v58  ;;  %v1413_v12 = vmul.f32 1.442695, %v1398_v11  ;;  %v2320_v58 = vld [vmem:[%s3764_s8 + $0x38] sm:$0xff] }
 0xaec   :  { %v1433_v62 = vsel %vm367_vm7, %v2517_v59, 0.0 }
 0xaed   :  { %v3340_v63 = vpop.eup %2518  ;;  %v1401_v0 = vmul.f32 1.442695, %v1392_v24  ;;  %1434 = vadd.xlane.f32.xlu1 %v1433_v62  ;;  %2520 = vpow2.f32 %v1405_v60  ;;  %v2318_v60 = vld [vmem:[%s3764_s8 + $0x28] sm:$0xff] }
 0xaee   :  { %v1415_v1 = vsel %vm367_vm7, %v3340_v63, 0.0 }
 0xaef   :  { %2522 = vpow2.f32 %v1401_v0  ;;  %1416 = vadd.xlane.f32.xlu0 %v1415_v1 }
 0xaf2   :  { %v1381_v2 = vpop.xlane.xlu1 %1380 }
 0xaf3   :  { %v1395_v55 = vsub.f32 %v1363_v32, %v1381_v2  ;;  %v3344_v3 = vpop.eup %2520 }
 0xaf4   :  { %v1424_v6 = vsel %vm371_vm8, %v3344_v3, 0.0 }
 0xaf5   :  { %v3346_v4 = vpop.eup %2522  ;;  %v1407_v51 = vmul.f32 1.442695, %v1395_v55 }
 0xaf6   :  { %v1418_v7 = vsel %vm371_vm8, %v3346_v4, 0.0 }
 0xaf7   :  { %2524 = vpow2.f32 %v1407_v51  ;;  %1425 = vadd.xlane.f32.xlu0 %v1424_v6  ;;  %1419 = vadd.xlane.f32.xlu1 %v1418_v7 }
 0xaf8   :  { %2526 = vpow2.f32 %v1409_v8 }
 0xaf9   :  { %2528 = vpow2.f32 %v1413_v12 }
 0xafb   :  { %v1458_v61 = vpop.permute.xlu0 %1457 }
 0xafc   :  { %2305 = vmatpush.msk.msrb.mxu0 %vm468_vm6, %v1458_v61 }
 0xafd   :  { %v2525_v36 = vpop.eup %2524 }
 0xafe   :  { %v1427_v10 = vsel %vm367_vm7, %v2525_v36, 0.0  ;;  %v2527_v13 = vpop.eup %2526 }
 0xaff   :  { %1428 = vadd.xlane.f32.xlu2 %v1427_v10  ;;  %v1430_v38 = vsel %vm371_vm8, %v2527_v13, 0.0  ;;  %v2529_v14 = vpop.eup %2528 }
 0xb00   :  { %v1436_v18 = vsel %vm371_vm8, %v2529_v14, 0.0 }
 0xb07   :  { %1431 = vadd.xlane.f32.xlu2 %v1430_v38 }
 0xb0a   :  { %v2448_v42 = vpop.permute.xlu1 %2447 }
 0xb0b   :  { %v2450_v25 = vunpack.i.h.bf16 %v2448_v42  ;;  %v2449_v15 = vunpack.i.l.bf16 %v2448_v42 }
 0xb0d   :  { %1555 = vmatpush.msrb.mxu2 %v2449_v15  ;;  %1591 = vmatpush.msrb.mxu3 %v2450_v25 }
 0xb0f   :  { %1437 = vadd.xlane.f32.xlu2 %v1436_v18  ;;  %1712 = vmatpush.msra.mxu3 %v2320_v58  ;;  %v2332_v58 = vld [vmem:[%s3766_s10 + $0x80] sm:$0xff] }
 0xb10   :  { %2452 = vrot.lane.b32.xlu1 %v2451_v16, %s2588_s3 }
 0xb27   :  { %1493 = vrot.lane.b32.xlu2 %v3267_v53, %s2588_s3 }
 0xb56   :  { %v1423_v19 = vpop.xlane.xlu1 %1422 }
 0xb60   :  { %v1435_v29 = vpop.xlane.xlu1 %1434 }
 0xb61   :  { %2530 = vrcp.f32 %v1435_v29 }
 0xb62   :  { %v1417_v26 = vpop.xlane.xlu0 %1416 }
 0xb67   :  { %v2531_v21 = vpop.eup %2530 }
 0xb68   :  { %v1453_v22 = vmul.f32 %v2531_v21, %v2517_v59  ;;  %v2317_v59 = vld [vmem:[%s3764_s8 + $0x20] sm:$0xff] }
 0xb6a   :  { %2315 = vmatmul.msk.f32.vlgmr.msrb.gmra.mxu3 %vm367_vm7, %v1453_v22  ;;  %v1420_v47 = vpop.xlane.xlu1 %1419  ;;  %v1426_v43 = vpop.xlane.xlu0 %1425 }
 0xb72   :  { %v1429_v23 = vpop.xlane.xlu2 %1428 }
 0xb73   :  { %2532 = vrcp.f32 %v1429_v23 }
 0xb74   :  { %2534 = vrcp.f32 %v1417_v26 }
 0xb79   :  { %v2533_v27 = vpop.eup %2532 }
 0xb7a   :  { %v1451_v57 = vmul.f32 %v2533_v27, %v2525_v36  ;;  %v1432_v28 = vpop.xlane.xlu2 %1431  ;;  %v2535_v30 = vpop.eup %2534  ;;  %v2465_v36 = vld [vmem:[%s3765_s9 + $0x1] ss:$0 sm:$0xff]  ;;  %s2590_s9 = smov 32  }
 0xb7b   :  { %2536 = vrcp.f32 %v1432_v28  ;;  %v1447_v37 = vmul.f32 %v2535_v30, %v3340_v63 }
 0xb7c   :  { %2312 = vmatmul.msk.f32.vlgmr.msrb.gmra.mxu2 %vm367_vm7, %v1451_v57  ;;  %2538 = vrcp.f32 %v1423_v19 }
 0xb7d   :  { %2540 = vrcp.f32 %v1420_v47 }
 0xb81   :  { %v2537_v53 = vpop.eup %2536 }
 0xb82   :  { %v1438_v31 = vpop.xlane.xlu2 %1437  ;;  %v2453_v32 = vpop.permute.xlu1 %2452  ;;  %v1452_v33 = vmul.f32 %v2537_v53, %v2527_v13 }
 0xb83   :  { %2542 = vrcp.f32 %v1438_v31  ;;  %v2454_v34 = vunpack.i.l.bf16 %v2453_v32  ;;  %v2539_v41 = vpop.eup %2538  ;;  %v2455_v50 = vunpack.i.h.bf16 %v2453_v32 }
 0xb84   :  { %2313 = vmatmul.msk.f32.gmra.mxu2 %vm367_vm7, %v1452_v33  ;;  %v2541_v40 = vpop.eup %2540  ;;  %2544 = vrcp.f32 %v1426_v43  ;;  %v1449_v54 = vmul.f32 %v2539_v41, %v3335_v44  ;;  %v2319_v44 = vld [vmem:[%s3764_s8 + $0x30] sm:$0xff]  ;;  %v2345_v41 = vld [vmem:[%s3766_s10 + $0xe8] sm:$0xff]  ;;  %v2347_v43 = vld [vmem:[%s3766_s10 + $0xf8] sm:$0xff] }
 0xb85   :  { %1483 = vmatpush.msrb.mxu0 %v2454_v34  ;;  %v1448_v49 = vmul.f32 %v2541_v40, %v3346_v4  ;;  %1683 = vmatpush.msra.mxu2 %v2319_v44  ;;  %v2346_v40 = vld [vmem:[%s3766_s10 + $0xf0] sm:$0xff]  ;;  %v2333_v44 = vld [vmem:[%s3766_s10 + $0x88] sm:$0xff] }
 0xb86   :  { %2306 = vmatmul.msk.f32.vlgmr.msrb.gmra.mxu0 %vm367_vm7, %v1447_v37  ;;  %v2344_v37 = vld [vmem:[%s3766_s10 + $0xe0] sm:$0xff]  ;;  %1916 = vmatpush.msrb.mxu3 %v2347_v43 }
 0xb87   :  { %1625 = vmatpush.msra.mxu0 %v2317_v59  ;;  %1893 = vmatpush.msrb.mxu2 %v2346_v40  ;;  %v2334_v59 = vld [vmem:[%s3766_s10 + $0x90] sm:$0xff]  ;;  %v2397_v40 = vld [vmem:[%s3768_s12 + $0x340] sm:$0xff] }
 0xb88   :  { %v2413_v43 = vld [vmem:[%s3768_s12 + $0x3c0] sm:$0xff] }
 0xb89   :  { %v2543_v20 = vpop.eup %2542  ;;  %1847 = vmatpush.msrb.mxu0 %v2344_v37  ;;  %v2364_v37 = vld [vmem:[%s3768_s12 + $0x238] sm:$0xff] }
 0xb8a   :  { %v1494_v46 = vpop.permute.xlu2 %1493  ;;  %v1454_v48 = vmul.f32 %v2543_v20, %v2529_v14  ;;  %v2545_v52 = vpop.eup %2544  ;;  %v2340_v20 = vld [vmem:[%s3766_s10 + $0xc0] sm:$0xff] }
 0xb8b   :  { %2308 = vmatpush.msk.msrb.mxu1 %vm468_vm6, %v1494_v46  ;;  %v1450_v56 = vmul.f32 %v2545_v52, %v3344_v3  ;;  %v2341_v46 = vld [vmem:[%s3766_s10 + $0xc8] sm:$0xff]  ;;  %1848 = vmatpush.msrb.mxu0 %v2340_v20  ;;  %v2338_v52 = vld [vmem:[%s3766_s10 + $0xb0] sm:$0xff] }
 0xb8c   :  { %2316 = vmatmul.msk.f32.gmra.mxu3 %vm367_vm7, %v1454_v48  ;;  %v2342_v48 = vld [vmem:[%s3766_s10 + $0xd0] sm:$0xff] }
 0xb8d   :  { %1519 = vmatpush.msrb.mxu1 %v2455_v50  ;;  %v2343_v50 = vld [vmem:[%s3766_s10 + $0xd8] sm:$0xff]  ;;  %1894 = vmatpush.msrb.mxu2 %v2342_v48  ;;  %v2363_v48 = vld [vmem:[%s3768_s12 + $0x230] sm:$0xff] }
 0xb8e   :  { %2307 = vmatmul.msk.f32.gmra.mxu0 %vm367_vm7, %v1448_v49  ;;  %2309 = vmatmul.msk.f32.vlgmr.msrb.gmra.mxu1 %vm367_vm7, %v1449_v54  ;;  %v2336_v54 = vld [vmem:[%s3766_s10 + $0xa0] sm:$0xff]  ;;  %v2337_v49 = vld [vmem:[%s3766_s10 + $0xa8] sm:$0xff] }
 0xb8f   :  { %1654 = vmatpush.msra.mxu1 %v2318_v60  ;;  %1917 = vmatpush.msrb.mxu3 %v2343_v50  ;;  %v2335_v60 = vld [vmem:[%s3766_s10 + $0x98] sm:$0xff]  ;;  %v2379_v50 = vld [vmem:[%s3768_s12 + $0x2b0] sm:$0xff] }
 0xb90   :  { %1849 = vmatpush.msrb.mxu0 %v2336_v54  ;;  %1895 = vmatpush.msrb.mxu2 %v2338_v52  ;;  %v2396_v52 = vld [vmem:[%s3768_s12 + $0x338] sm:$0xff] }
 0xb91   :  { %1870 = vmatpush.msrb.mxu1 %v2345_v41  ;;  %v2380_v41 = vld [vmem:[%s3768_s12 + $0x2b8] sm:$0xff] }
 0xb92   :  { %1850 = vmatpush.msrb.mxu0 %v2332_v58  ;;  %1896 = vmatpush.msrb.mxu2 %v2334_v59 }
 0xb93   :  { %1871 = vmatpush.msrb.mxu1 %v2341_v46 }
 0xb95   :  { %1872 = vmatpush.msrb.mxu1 %v2337_v49  ;;  %v2467_v49 = vld [vmem:[%s3771_s15 + $0x1] ss:$0 sm:$0xff] }
 0xb96   :  { %2310 = vmatmul.msk.f32.gmra.mxu1 %vm367_vm7, %v1450_v56  ;;  %v2339_v56 = vld [vmem:[%s3766_s10 + $0xb8] sm:$0xff]  ;;  %s2218_s10 = sshll.u32 %s2591_s0, 4  ;;  %s2219_s10 = int_to_ptr.vmem [resolvable:$true] %s2218_s10 }
 0xb97   :  { %1918 = vmatpush.msrb.mxu3 %v2339_v56  ;;  %1873 = vmatpush.msrb.mxu1 %v2333_v44  ;;  %v2412_v56 = vld [vmem:[%s3768_s12 + $0x3b8] sm:$0xff]  ;;  %v2362_v44 = vld [vmem:[%s3768_s12 + $0x228] sm:$0xff] }
 0xb99   :  { %1919 = vmatpush.msrb.mxu3 %v2335_v60  ;;  %v2395_v60 = vld [vmem:[%s3768_s12 + $0x330] sm:$0xff] }
 0xbed   :  { %v1593_v24 = vpop.f32.mrf.mxu3 }
 0xbee   :  { %2327 = vmatmul.msk.f32.vlgmr.msra.gmra.mxu3 %vm214_vm5, %v1593_v24 }
 0xbff   :  { %v1557_v62 = vpop.f32.mrf.mxu2 }
 0xc00   :  { %2325 = vmatmul.msk.f32.vlgmr.msra.gmra.mxu2 %vm214_vm5, %v1557_v62 }
 0xc03   :  { %v1485_v63 = vpop.f32.mrf.mxu0 }
 0xc04   :  { %2321 = vmatmul.msk.f32.vlgmr.msra.gmra.mxu0 %vm214_vm5, %v1485_v63 }
 0xc07   :  { %v1560_v0 = vpop.f32.mrf.mxu2 }
 0xc08   :  { %2326 = vmatmul.msk.f32.gmra.mxu2 %vm214_vm5, %v1560_v0  ;;  %v2372_v0 = vld [vmem:[%s3768_s12 + $0x278] sm:$0xff] }
 0xc09   :  { %2005 = vmatpush.msra.mxu0 %v2372_v0 }
 0xc0b   :  { %v1488_v1 = vpop.f32.mrf.mxu0  ;;  %v1521_v35 = vpop.f32.mrf.mxu1 }
 0xc0c   :  { %2322 = vmatmul.msk.f32.gmra.mxu0 %vm214_vm5, %v1488_v1  ;;  %2323 = vmatmul.msk.f32.vlgmr.msra.gmra.mxu1 %vm214_vm5, %v1521_v35  ;;  %v2388_v1 = vld [vmem:[%s3768_s12 + $0x2f8] sm:$0xff]  ;;  %v2371_v35 = vld [vmem:[%s3768_s12 + $0x270] sm:$0xff] }
 0xc0d   :  { %2028 = vmatpush.msra.mxu1 %v2388_v1  ;;  %2006 = vmatpush.msra.mxu0 %v2371_v35  ;;  %v2361_v1 = vld [vmem:[%s3768_s12 + $0x220] sm:$0xff] }
 0xc0e   :  { %v2377_v35 = vld [vmem:[%s3768_s12 + $0x2a0] sm:$0xff] }
 0xc0f   :  { %v1596_v2 = vpop.f32.mrf.mxu3 }
 0xc10   :  { %2328 = vmatmul.msk.f32.gmra.mxu3 %vm214_vm5, %v1596_v2  ;;  %v2387_v2 = vld [vmem:[%s3768_s12 + $0x2f0] sm:$0xff] }
 0xc11   :  { %2029 = vmatpush.msra.mxu1 %v2387_v2 }
 0xc13   :  { %v1524_v55 = vpop.f32.mrf.mxu1 }
 0xc14   :  { %2324 = vmatmul.msk.f32.gmra.mxu1 %vm214_vm5, %v1524_v55 }
 0xc71   :  { %v1714_v7 = vpop.f32.mrf.mxu3 }
 0xc72   :  { %v1725_v11 = vsel %vm127_vm2, %v1714_v7, 0.0  ;;  %v2420_v7 = vld [vmem:[%s3768_s12 + $0x3f8] sm:$0xff] }
 0xc73   :  { %2074 = vmatpush.msra.mxu3 %v2420_v7  ;;  %v2394_v7 = vld [vmem:[%s3768_s12 + $0x328] sm:$0xff] }
 0xc81   :  { %v1627_v3 = vpop.f32.mrf.mxu0 }
 0xc82   :  { %v1720_v51 = vsel %vm127_vm2, %v1627_v3, 0.0  ;;  %v2370_v3 = vld [vmem:[%s3768_s12 + $0x268] sm:$0xff] }
 0xc83   :  { %v1685_v4 = vpop.f32.mrf.mxu2  ;;  %2007 = vmatpush.msra.mxu0 %v2370_v3  ;;  %v2376_v3 = vld [vmem:[%s3768_s12 + $0x298] sm:$0xff] }
 0xc84   :  { %v1723_v9 = vsel %vm127_vm2, %v1685_v4, 0.0  ;;  %v2386_v4 = vld [vmem:[%s3768_s12 + $0x2e8] sm:$0xff] }
 0xc85   :  { %2030 = vmatpush.msra.mxu1 %v2386_v4 }
 0xc89   :  { %v1656_v5 = vpop.f32.mrf.mxu1  ;;  %v1630_v10 = vpop.f32.mrf.mxu0 }
 0xc8a   :  { %v1721_v6 = vsel %vm127_vm2, %v1656_v5, 0.0  ;;  %v1727_v14 = vsel %vm729_vm9, %v1630_v10, 0.0  ;;  %v2404_v5 = vld [vmem:[%s3768_s12 + $0x378] sm:$0xff]  ;;  %v2402_v10 = vld [vmem:[%s3768_s12 + $0x368] sm:$0xff] }
 0xc8b   :  { %v1722_v8 = vadd.f32 %v1721_v6, %v1720_v51  ;;  %v1688_v13 = vpop.f32.mrf.mxu2  ;;  %v2369_v6 = vld [vmem:[%s3768_s12 + $0x260] sm:$0xff]  ;;  %2051 = vmatpush.msra.mxu2 %v2404_v5 }
 0xc8c   :  { %v1730_v19 = vsel %vm729_vm9, %v1688_v13, 0.0  ;;  %2008 = vmatpush.msra.mxu0 %v2369_v6  ;;  %v2375_v6 = vld [vmem:[%s3768_s12 + $0x290] sm:$0xff] }
 0xc8d   :  { %v1724_v61 = vadd.f32 %v1723_v9, %v1722_v8  ;;  %v2385_v8 = vld [vmem:[%s3768_s12 + $0x2e0] sm:$0xff]  ;;  %v2403_v9 = vld [vmem:[%s3768_s12 + $0x370] sm:$0xff] }
 0xc8e   :  { %2052 = vmatpush.msra.mxu2 %v2403_v9  ;;  %2031 = vmatpush.msra.mxu1 %v2385_v8  ;;  %v2410_v8 = vld [vmem:[%s3768_s12 + $0x3a8] sm:$0xff] }
 0xc8f   :  { %v1726_v12 = vadd.f32 %v1725_v11, %v1724_v61  ;;  %v2419_v61 = vld [vmem:[%s3768_s12 + $0x3f0] sm:$0xff]  ;;  %v2358_v9 = vld [vmem:[%s3768_s12 + $0x208] sm:$0xff] }
 0xc90   :  { %2075 = vmatpush.msra.mxu3 %v2419_v61  ;;  %2053 = vmatpush.msra.mxu2 %v2402_v10  ;;  %v2374_v61 = vld [vmem:[%s3768_s12 + $0x288] sm:$0xff]  ;;  %v2357_v10 = vld [vmem:[%s3768_s12 + $0x200] sm:$0xff] }
 0xc91   :  { %v1659_v38 = vpop.f32.mrf.mxu1  ;;  %v1739_v42 = vadd.f32 %v2465_v36, %v1726_v12  ;;  %v2418_v12 = vld [vmem:[%s3768_s12 + $0x3e8] sm:$0xff] }
 0xc92   :  { %v1728_v25 = vsel %vm729_vm9, %v1659_v38, 0.0  ;;  %v2368_v38 = vld [vmem:[%s3768_s12 + $0x258] sm:$0xff]  ;;  %2076 = vmatpush.msra.mxu3 %v2418_v12  ;;  %v2373_v12 = vld [vmem:[%s3768_s12 + $0x280] sm:$0xff] }
 0xc93   :  { %v1729_v15 = vadd.f32 %v1728_v25, %v1727_v14  ;;  %v1717_v16 = vpop.f32.mrf.mxu3  ;;  %v1741_v18 = vadd.f32 %v1739_v42, %v3235_v39  ;;  %v2384_v42 = vld [vmem:[%s3768_s12 + $0x2d8] sm:$0xff]  ;;  %v2401_v14 = vld [vmem:[%s3768_s12 + $0x360] sm:$0xff]  ;;  %2009 = vmatpush.msra.mxu0 %v2368_v38 }
 0xc94   :  { %v1732_v22 = vsel %vm729_vm9, %v1717_v16, 0.0  ;;  %v2417_v25 = vld [vmem:[%s3768_s12 + $0x3e0] sm:$0xff]  ;;  %v2367_v16 = vld [vmem:[%s3768_s12 + $0x250] sm:$0xff]  ;;  %2032 = vmatpush.msra.mxu1 %v2384_v42  ;;  %2054 = vmatpush.msra.mxu2 %v2401_v14  ;;  %v2408_v38 = vld [vmem:[%s3768_s12 + $0x398] sm:$0xff] }
 0xc95   :  { %v1731_v29 = vadd.f32 %v1730_v19, %v1729_v15  ;;  %v1747_v21 = vsel %vm127_vm2, %v1741_v18, 0.0  ;;  %v2400_v19 = vld [vmem:[%s3768_s12 + $0x358] sm:$0xff]  ;;  %2077 = vmatpush.msra.mxu3 %v2417_v25  ;;  %2010 = vmatpush.msra.mxu0 %v2367_v16  ;;  %v2391_v42 = vld [vmem:[%s3768_s12 + $0x310] sm:$0xff]  ;;  %v2390_v25 = vld [vmem:[%s3768_s12 + $0x308] sm:$0xff] }
 0xc96   :  { %1748 = vadd.xlane.f32.xlu2 %v1747_v21  ;;  %2055 = vmatpush.msra.mxu2 %v2400_v19  ;;  %v2407_v14 = vld [vmem:[%s3768_s12 + $0x390] sm:$0xff]  ;;  %v2389_v16 = vld [vmem:[%s3768_s12 + $0x300] sm:$0xff] }
 0xc97   :  { %v1733_v23 = vadd.f32 %v1732_v22, %v1731_v29  ;;  %v2416_v29 = vld [vmem:[%s3768_s12 + $0x3d8] sm:$0xff]  ;;  %v2366_v22 = vld [vmem:[%s3768_s12 + $0x248] sm:$0xff]  ;;  %v2348_v19 = vld [vmem:[%s3767_s11 + $0x4] sm:$0xf] }
 0xc98   :  { %2078 = vmatpush.msra.mxu3 %v2416_v29  ;;  %2011 = vmatpush.msra.mxu0 %v2366_v22  ;;  %v1821_v29 = vperm.slane %v2348_v19, 0 }
 0xc99   :  { %v1740_v26 = vadd.f32 %v2465_v36, %v1733_v23  ;;  %v2382_v23 = vld [vmem:[%s3768_s12 + $0x2c8] sm:$0xff] }
 0xc9b   :  { %v1742_v27 = vadd.f32 %v1740_v26, %v3239_v45  ;;  %v2399_v26 = vld [vmem:[%s3768_s12 + $0x350] sm:$0xff] }
 0xc9c   :  { %2056 = vmatpush.msra.mxu2 %v2399_v26 }
 0xc9d   :  { %v1750_v47 = vsel %vm729_vm9, %v1742_v27, 0.0 }
 0xc9e   :  { %1751 = vadd.xlane.f32.xlu1 %v1750_v47 }
 0xd09   :  { %v1749_v57 = vpop.xlane.xlu2 %1748 }
 0xd0a   :  { %v1753_v28 = vmul.f32 %v1749_v57, %v2898_v17  ;;  %v2365_v57 = vld [vmem:[%s3768_s12 + $0x240] sm:$0xff] }
 0xd0b   :  { %2012 = vmatpush.msra.mxu0 %v2365_v57 }
 0xd0c   :  { %v3412_v30 = vsub.f32 %v1741_v18, %v1753_v28  ;;  %v2383_v18 = vld [vmem:[%s3768_s12 + $0x2d0] sm:$0xff]  ;;  %v2381_v28 = vld [vmem:[%s3768_s12 + $0x2c0] sm:$0xff] }
 0xd0d   :  { %2033 = vmatpush.msra.mxu1 %v2383_v18  ;;  %2013 = vmatpush.msra.mxu0 %v2364_v37  ;;  %v2405_v18 = vld [vmem:[%s3768_s12 + $0x380] sm:$0xff] }
 0xd0e   :  { %v1757_v39 = vmul.f32 %v3412_v30, %v3412_v30 }
 0xd0f   :  { %2034 = vmatpush.msra.mxu1 %v2382_v23  ;;  %2014 = vmatpush.msra.mxu0 %v2363_v48 }
 0xd10   :  { %v1759_v53 = vsel %vm127_vm2, %v1757_v39, 0.0 }
 0xd11   :  { %1760 = vadd.xlane.f32.xlu0 %v1759_v53  ;;  %v1752_v31 = vpop.xlane.xlu1 %1751  ;;  %v2398_v53 = vld [vmem:[%s3768_s12 + $0x348] sm:$0xff]  ;;  %2035 = vmatpush.msra.mxu1 %v2381_v28  ;;  %v1823_v28 = vperm.slane %v2348_v19, 2 }
 0xd12   :  { %v1754_v32 = vmul.f32 %v1752_v31, %v2898_v17  ;;  %v2414_v31 = vld [vmem:[%s3768_s12 + $0x3c8] sm:$0xff]  ;;  %2057 = vmatpush.msra.mxu2 %v2398_v53  ;;  %2015 = vmatpush.msra.mxu0 %v2362_v44 }
 0xd13   :  { %2036 = vmatpush.msra.mxu1 %v2380_v41 }
 0xd14   :  { %v3418_v33 = vsub.f32 %v1742_v27, %v1754_v32  ;;  %v2415_v27 = vld [vmem:[%s3768_s12 + $0x3d0] sm:$0xff]  ;;  %v2466_v32 = vld [vmem:[%s3770_s14 + $0x1] ss:$0 sm:$0xff]  ;;  %2058 = vmatpush.msra.mxu2 %v2397_v40  ;;  %2016 = vmatpush.msra.mxu0 %v2361_v1 }
 0xd15   :  { %2079 = vmatpush.msra.mxu3 %v2415_v27  ;;  %2037 = vmatpush.msra.mxu1 %v2379_v50 }
 0xd16   :  { %v1758_v45 = vmul.f32 %v3418_v33, %v3418_v33  ;;  %2059 = vmatpush.msra.mxu2 %v2396_v52 }
 0xd17   :  { %2080 = vmatpush.msra.mxu3 %v2414_v31 }
 0xd18   :  { %v1762_v34 = vsel %vm729_vm9, %v1758_v45, 0.0  ;;  %2060 = vmatpush.msra.mxu2 %v2395_v60 }
 0xd19   :  { %1763 = vadd.xlane.f32.xlu0 %v1762_v34  ;;  %2081 = vmatpush.msra.mxu3 %v2413_v43 }
 0xd1a   :  { %2061 = vmatpush.msra.mxu2 %v2394_v7 }
 0xd1b   :  { %2082 = vmatpush.msra.mxu3 %v2412_v56 }
 0xd84   :  { %v1761_v24 = vpop.xlane.xlu0 %1760 }
 0xd85   :  { %v1765_v62 = vmul.f32 %v1761_v24, %v2898_v17  ;;  %v2411_v24 = vld [vmem:[%s3768_s12 + $0x3b0] sm:$0xff] }
 0xd86   :  { %2083 = vmatpush.msra.mxu3 %v2411_v24 }
 0xd87   :  { %v3472_v63 = vadd.f32 1e-05, %v1765_v62 }
 0xd88   :  { %2084 = vmatpush.msra.mxu3 %v2410_v8 }
 0xd89   :  { %2546 = vrsqrt.f32 %v3472_v63  ;;  %vm1775_vm6 = vweird.f32 %v3472_v63 }
 0xd8c   :  { %v1764_v55 = vpop.xlane.xlu0 %1763 }
 0xd8d   :  { %v1766_v51 = vmul.f32 %v1764_v55, %v2898_v17  ;;  %v2360_v55 = vld [vmem:[%s3768_s12 + $0x218] sm:$0xff] }
 0xd8e   :  { %2017 = vmatpush.msra.mxu0 %v2360_v55 }
 0xd8f   :  { %v3512_v36 = vpop.eup %2546  ;;  %v3514_v11 = vadd.f32 1e-05, %v1766_v51 }
 0xd90   :  { %v1770_v13 = vmul.f32 %v3512_v36, %v3472_v63  ;;  %vm1776_vm5 = vweird.f32 %v3512_v36 }
 0xd91   :  { %2548 = vrsqrt.f32 %v3514_v11  ;;  %vm1777_vm7 = vmor %vm1775_vm6, %vm1776_vm5  ;;  %vm1785_vm13 = vweird.f32 %v3514_v11 }
 0xd92   :  { %v1771_v15 = vmul.f32 %v3512_v36, %v1770_v13  ;;  %v2392_v13 = vld [vmem:[%s3768_s12 + $0x318] sm:$0xff] }
 0xd94   :  { %v1772_v21 = vmul.f32 0.5, %v1771_v15  ;;  %v2406_v15 = vld [vmem:[%s3768_s12 + $0x388] sm:$0xff] }
 0xd96   :  { %v1773_v47 = vsub.f32 1.5, %v1772_v21  ;;  %v1822_v21 = vperm.slane %v2348_v19, 1 }
 0xd97   :  { %v2549_v39 = vpop.eup %2548 }
 0xd98   :  { %v1774_v45 = vmul.f32 %v3512_v36, %v1773_v47  ;;  %v1780_v34 = vmul.f32 %v2549_v39, %v3514_v11  ;;  %vm1786_vm8 = vweird.f32 %v2549_v39  ;;  %v2409_v11 = vld [vmem:[%s3768_s12 + $0x3a0] sm:$0xff] }
 0xd99   :  { %vm1787_vm14 = vmor %vm1785_vm13, %vm1786_vm8  ;;  %2085 = vmatpush.msra.mxu3 %v2409_v11 }
 0xd9a   :  { %v1778_v20 = vsel %vm1777_vm7, %v3512_v36, %v1774_v45  ;;  %v1781_v46 = vmul.f32 %v2549_v39, %v1780_v34  ;;  %v2393_v36 = vld [vmem:[%s3768_s12 + $0x320] sm:$0xff] }
 0xd9b   :  { %v1789_v54 = vmul.f32 %v1778_v20, %v3412_v30  ;;  %v2378_v30 = vld [vmem:[%s3768_s12 + $0x2a8] sm:$0xff]  ;;  %2062 = vmatpush.msra.mxu2 %v2393_v36  ;;  %2086 = vmatpush.msra.mxu3 %v2408_v38 }
 0xd9c   :  { %v1782_v58 = vmul.f32 0.5, %v1781_v46  ;;  %2038 = vmatpush.msra.mxu1 %v2378_v30  ;;  %v2468_v30 = vld [vmem:[%s3793_s30 + $0x1] ss:$0 sm:$0xff] }
 0xd9d   :  { %v1794_v59 = vmul.f32 %v2466_v32, %v1789_v54  ;;  %2063 = vmatpush.msra.mxu2 %v2392_v13  ;;  %2087 = vmatpush.msra.mxu3 %v2407_v14 }
 0xd9e   :  { %v1783_v62 = vsub.f32 1.5, %v1782_v58  ;;  %2039 = vmatpush.msra.mxu1 %v2377_v35 }
 0xd9f   :  { %v3624_v63 = vadd.f32 %v2467_v49, %v1794_v59  ;;  %2064 = vmatpush.msra.mxu2 %v2391_v42  ;;  %2088 = vmatpush.msra.mxu3 %v2406_v15 }
 0xda0   :  { %v1784_v0 = vmul.f32 %v2549_v39, %v1783_v62  ;;  %2040 = vmatpush.msra.mxu1 %v2376_v3 }
 0xda1   :  { %2349 = vmatmul.msk.f32.vlgmr.msrb.gmra.mxu0 %vm127_vm2, %v3624_v63  ;;  %2351 = vmatmul.msk.f32.vlgmr.msrb.gmra.mxu1 %vm127_vm2, %v3624_v63 }
 0xda2   :  { %v1788_v2 = vsel %vm1787_vm14, %v2549_v39, %v1784_v0  ;;  %2353 = vmatmul.msk.f32.vlgmr.msrb.gmra.mxu2 %vm127_vm2, %v3624_v63  ;;  %2355 = vmatmul.msk.f32.vlgmr.msrb.gmra.mxu3 %vm127_vm2, %v3624_v63  ;;  %v1824_v39 = vperm.slane %v2348_v19, 3 }
 0xda3   :  { %v1790_v4 = vmul.f32 %v1788_v2, %v3418_v33  ;;  %v2359_v33 = vld [vmem:[%s3768_s12 + $0x210] sm:$0xff]  ;;  %2041 = vmatpush.msra.mxu1 %v2375_v6  ;;  %2065 = vmatpush.msra.mxu2 %v2390_v25 }
 0xda4   :  { %2018 = vmatpush.msra.mxu0 %v2359_v33  ;;  %2089 = vmatpush.msra.mxu3 %v2405_v18  ;;  %v2166_v18 = vld [vmem:[%s3774_s18 + $0x18] sm:$0xff] }
 0xda5   :  { %v1795_v5 = vmul.f32 %v2466_v32, %v1790_v4  ;;  %2042 = vmatpush.msra.mxu1 %v2374_v61  ;;  %2066 = vmatpush.msra.mxu2 %v2389_v16 }
 0xda6   :  { %2019 = vmatpush.msra.mxu0 %v2358_v9 }
 0xda7   :  { %v3648_v51 = vadd.f32 %v2467_v49, %v1795_v5  ;;  %2043 = vmatpush.msra.mxu1 %v2373_v12 }
 0xda8   :  { %2020 = vmatpush.msra.mxu0 %v2357_v10 }
 0xda9   :  { %2350 = vmatmul.msk.f32.gmra.mxu0 %vm127_vm2, %v3648_v51  ;;  %2352 = vmatmul.msk.f32.gmra.mxu1 %vm127_vm2, %v3648_v51 }
 0xdaa   :  { %2354 = vmatmul.msk.f32.gmra.mxu2 %vm127_vm2, %v3648_v51  ;;  %2356 = vmatmul.msk.f32.gmra.mxu3 %vm127_vm2, %v3648_v51 }
 0xdab   :  { %2186 = vmatpush.msrb.mxu0 %v2166_v18 }
 0xe1e   :  { %v1852_v22 = vpop.f32.mrf.mxu0  ;;  %v1875_v23 = vpop.f32.mrf.mxu1 }
 0xe1f   :  { %v1853_v26 = vadd.f32 %v1852_v22, %v1821_v29  ;;  %v1876_v27 = vadd.f32 %v1875_v23, %v1822_v21  ;;  %v2163_v22 = vld [vmem:[%s3774_s18] sm:$0xff] }
 0xe21   :  { %v1927_v47 = vmax.f32 %v1853_v26, 0.0  ;;  %v1928_v57 = vmax.f32 %v1876_v27, 0.0 }
 0xe23   :  { %2021 = vmatmul.f32.vlgmr.msra.gmra.mxu0 %v1927_v47  ;;  %2044 = vmatmul.f32.vlgmr.msra.gmra.mxu1 %v1928_v57 }
 0xe25   :  { %v1898_v53 = vpop.f32.mrf.mxu2  ;;  %v1921_v31 = vpop.f32.mrf.mxu3 }
 0xe26   :  { %v1899_v32 = vadd.f32 %v1898_v53, %v1823_v28  ;;  %v1922_v45 = vadd.f32 %v1921_v31, %v1824_v39  ;;  %v1855_v34 = vpop.f32.mrf.mxu0  ;;  %v1878_v37 = vpop.f32.mrf.mxu1 }
 0xe27   :  { %v1856_v41 = vadd.f32 %v1855_v34, %v1821_v29  ;;  %v1879_v40 = vadd.f32 %v1878_v37, %v1822_v21  ;;  %v2165_v29 = vld [vmem:[%s3774_s18 + $0x10] sm:$0xff]  ;;  %v2164_v21 = vld [vmem:[%s3774_s18 + $0x8] sm:$0xff]  ;;  %v2469_v34 = vld [vmem:[%s3772_s16 + $0x1] ss:$0 sm:$0xff] }
 0xe28   :  { %v1929_v43 = vmax.f32 %v1899_v32, 0.0  ;;  %v1930_v20 = vmax.f32 %v1922_v45, 0.0  ;;  %2187 = vmatpush.msrb.mxu0 %v2165_v29 }
 0xe29   :  { %v1931_v46 = vmax.f32 %v1856_v41, 0.0  ;;  %v1932_v48 = vmax.f32 %v1879_v40, 0.0 }
 0xe2a   :  { %2067 = vmatmul.f32.vlgmr.msra.gmra.mxu2 %v1929_v43  ;;  %2090 = vmatmul.f32.vlgmr.msra.gmra.mxu3 %v1930_v20 }
 0xe2b   :  { %2024 = vmatmul.f32.gmra.mxu0 %v1931_v46  ;;  %2047 = vmatmul.f32.gmra.mxu1 %v1932_v48 }
 0xe2c   :  { %2188 = vmatpush.msrb.mxu0 %v2164_v21 }
 0xe2d   :  { %v1901_v50 = vpop.f32.mrf.mxu2  ;;  %v1924_v54 = vpop.f32.mrf.mxu3 }
 0xe2e   :  { %v1902_v49 = vadd.f32 %v1901_v50, %v1823_v28  ;;  %v1925_v52 = vadd.f32 %v1924_v54, %v1824_v39  ;;  %2189 = vmatpush.msrb.mxu0 %v2163_v22 }
 0xe30   :  { %v1933_v56 = vmax.f32 %v1902_v49, 0.0  ;;  %v1934_v58 = vmax.f32 %v1925_v52, 0.0 }
 0xe32   :  { %2070 = vmatmul.f32.gmra.mxu2 %v1933_v56  ;;  %2093 = vmatmul.f32.gmra.mxu3 %v1934_v58 }
 0xea0   :  { %v2022_v44 = vpop.f32.mrf.mxu0  ;;  %v2045_v60 = vpop.f32.mrf.mxu1 }
 0xea1   :  { %v2023_v59 = vadd.f32 %v2468_v30, %v2022_v44 }
 0xea3   :  { %v2046_v24 = vadd.f32 %v2045_v60, %v2023_v59  ;;  %v2471_v60 = vld [vmem:[%s3775_s19] ss:$0 sm:$0xff] }
 0xea8   :  { %v2025_v62 = vpop.f32.mrf.mxu0  ;;  %v2048_v4 = vpop.f32.mrf.mxu1 }
 0xea9   :  { %v2026_v2 = vadd.f32 %v2468_v30, %v2025_v62 }
 0xeab   :  { %v2049_v5 = vadd.f32 %v2048_v4, %v2026_v2 }
 0xead   :  { %v2068_v0 = vpop.f32.mrf.mxu2  ;;  %v2091_v1 = vpop.f32.mrf.mxu3 }
 0xeae   :  { %v2069_v35 = vadd.f32 %v2068_v0, %v2046_v24 }
 0xeb0   :  { %v2092_v55 = vadd.f32 %v2091_v1, %v2069_v35 }
 0xeb2   :  { %v2097_v3 = vadd.f32 %v2092_v55, %v3624_v63 }
 0xeb4   :  { %v2103_v33 = vsel %vm127_vm2, %v2097_v3, 0.0 }
 0xeb5   :  { %v2071_v6 = vpop.f32.mrf.mxu2  ;;  %2104 = vadd.xlane.f32.xlu2 %v2103_v33  ;;  %v2094_v8 = vpop.f32.mrf.mxu3 }
 0xeb6   :  { %v2072_v7 = vadd.f32 %v2071_v6, %v2049_v5 }
 0xeb8   :  { %v2095_v9 = vadd.f32 %v2094_v8, %v2072_v7 }
 0xeba   :  { %v2098_v61 = vadd.f32 %v2095_v9, %v3648_v51 }
 0xebc   :  { %v2106_v36 = vsel %vm729_vm9, %v2098_v61, 0.0 }
 0xebd   :  { %2107 = vadd.xlane.f32.xlu0 %v2106_v36 }
 0xf28   :  { %v2105_v11 = vpop.xlane.xlu2 %2104 }
 0xf29   :  { %v2109_v10 = vmul.f32 %v2105_v11, %v2898_v17 }
 0xf2b   :  { %v2111_v12 = vsub.f32 %v2097_v3, %v2109_v10 }
 0xf2d   :  { %v2113_v13 = vmul.f32 %v2111_v12, %v2111_v12 }
 0xf2f   :  { %v2115_v63 = vsel %vm127_vm2, %v2113_v13, 0.0 }
 0xf30   :  { %2116 = vadd.xlane.f32.xlu2 %v2115_v63  ;;  %v2108_v38 = vpop.xlane.xlu0 %2107 }
 0xf31   :  { %v2110_v42 = vmul.f32 %v2108_v38, %v2898_v17 }
 0xf33   :  { %v2112_v14 = vsub.f32 %v2098_v61, %v2110_v42 }
 0xf35   :  { %v2114_v25 = vmul.f32 %v2112_v14, %v2112_v14 }
 0xf37   :  { %v2118_v15 = vsel %vm729_vm9, %v2114_v25, 0.0 }
 0xf38   :  { %2119 = vadd.xlane.f32.xlu0 %v2118_v15 }
 0xfa3   :  { %v2117_v51 = vpop.xlane.xlu2 %2116 }
 0xfa4   :  { %v2121_v16 = vmul.f32 %v2117_v51, %v2898_v17 }
 0xfa6   :  { %v2123_v19 = vadd.f32 1e-05, %v2121_v16 }
 0xfa8   :  { %2550 = vrsqrt.f32 %v2123_v19  ;;  %vm2131_vm15 = vweird.f32 %v2123_v19 }
 0xfab   :  { %v2120_v23 = vpop.xlane.xlu0 %2119 }
 0xfac   :  { %v2122_v26 = vmul.f32 %v2120_v23, %v2898_v17  ;;  %v2470_v17 = vld [vmem:[%s3773_s17 + $0x1] ss:$0 sm:$0xff] }
 0xfae   :  { %v2551_v27 = vpop.eup %2550  ;;  %v2124_v47 = vadd.f32 1e-05, %v2122_v26 }
 0xfaf   :  { %v2126_v57 = vmul.f32 %v2551_v27, %v2123_v19  ;;  %vm2132_vm9 = vweird.f32 %v2551_v27 }
 0xfb0   :  { %2552 = vrsqrt.f32 %v2124_v47  ;;  %vm2133_vm0 = vmor %vm2131_vm15, %vm2132_vm9  ;;  %vm2141_vm3 = vweird.f32 %v2124_v47 }
 0xfb1   :  { %v2127_v28 = vmul.f32 %v2551_v27, %v2126_v57 }
 0xfb3   :  { %v2128_v39 = vmul.f32 0.5, %v2127_v28 }
 0xfb5   :  { %v2129_v53 = vsub.f32 1.5, %v2128_v39 }
 0xfb6   :  { %v2553_v31 = vpop.eup %2552 }
 0xfb7   :  { %v2130_v32 = vmul.f32 %v2551_v27, %v2129_v53  ;;  %v2136_v45 = vmul.f32 %v2553_v31, %v2124_v47  ;;  %vm2142_vm1 = vweird.f32 %v2553_v31 }
 0xfb8   :  { %vm2143_vm4 = vmor %vm2141_vm3, %vm2142_vm1 }
 0xfb9   :  { %v2134_v37 = vsel %vm2133_vm0, %v2551_v27, %v2130_v32  ;;  %v2137_v41 = vmul.f32 %v2553_v31, %v2136_v45 }
 0xfba   :  { %v2145_v40 = vmul.f32 %v2134_v37, %v2111_v12 }
 0xfbb   :  { %v2138_v43 = vmul.f32 0.5, %v2137_v41 }
 0xfbc   :  { %v2150_v20 = vmul.f32 %v2469_v34, %v2145_v40 }
 0xfbd   :  { %v2139_v46 = vsub.f32 1.5, %v2138_v43 }
 0xfbe   :  { %v2155_v48 = vadd.f32 %v2470_v17, %v2150_v20 }
 0xfbf   :  { %v2140_v50 = vmul.f32 %v2553_v31, %v2139_v46 }
 0xfc0   :  { %v2158_v49 = vrot.slane %v2155_v48, 4 }
 0xfc1   :  { %v2144_v54 = vsel %vm2143_vm4, %v2553_v31, %v2140_v50 }
 0xfc2   :  { %v2146_v52 = vmul.f32 %v2144_v54, %v2112_v14  ;;  %v2160_v44 = vadd.f32 %v2158_v49, %v2155_v48 }
 0xfc4   :  { %v2151_v56 = vmul.f32 %v2469_v34, %v2146_v52 }
 0xfc6   :  { %v2156_v58 = vadd.f32 %v2470_v17, %v2151_v56 }
 0xfc8   :  { %v2161_v30 = vadd.f32 %v2160_v44, %v2156_v58 }
 0xfca   :  { %v2162_v59 = vmul.f32 0.33333334, %v2161_v30 }
 0xfcc   :  { %2424 = vmatmul.msk.f32.vlgmr.msrb.gmra.mxu0 %vm127_vm2, %v2162_v59 }
0x1049   :  { %v2191_v24 = vpop.f32.mrf.mxu0 }
0x104a   :  { %v2192_v62 = vadd.f32 %v2471_v60, %v2191_v24 }
0x104c   :  { %v2203_v0 = vrot.slane %v2192_v62, 3  ;;  %v2199_v1 = vrot.slane %v2192_v62, 2  ;;  %v2195_v35 = vrot.slane %v2192_v62, 1 }
0x104e   :  { %2204 = vrot.lane.b32.xlu0 %v2203_v0, %s2585_s24  ;;  %2200 = vrot.lane.b32.xlu2 %v2199_v1, %s2588_s3 }
0x104f   :  { %2196 = vrot.lane.b32.xlu1 %v2195_v35, %s2590_s9 }
0x10a8   :  { %v2201_v55 = vpop.permute.xlu2 %2200 }
0x10c0   :  { %v2205_v4 = vpop.permute.xlu0 %2204 }
0x10c1   :  { %v2197_v2 = vpop.permute.xlu1 %2196 }
0x10c2   :  { %v2207_v3 = vsel %vm127_vm2, %v2192_v62, %v2197_v2 }
0x10c3   :  { %v2209_v5 = vsel %vm2208_vm10, %v2207_v3, %v2201_v55 }
0x10c4   :  { %v2211_v33 = vsel %vm2210_vm11, %v2209_v5, %v2205_v4 }
0x10c5   :  { %2212 = vst [vmem:[#allocation2] sm:$0x1] %v2211_v33 }
0x10c6   :  { %2223 = dma.vmem_to_hbm [thread:$0]  %s2219_s10, 16, %s2221_s1, [#allocation3]  }
0x10c7   :  { %2580 = dma.done.wait [#allocation3], 16  }
0x10c8   :  { %2581 = vsyncadd [#allocation3], 4294967280 }
0x10c9   :  { %2228 = vsyncpa [#allocation3], 1 }

</bundles_post_ra>
